<compile_context>
chip_gen: v7x
topology: tpu7x:2x2x1
jax: 0.10.0
libtpu: 0.0.40
codegen_flags: <defaults>
</compile_context>

<pallas_src>
import functools

import jax
import jax.numpy as jnp
from jax import lax
from jax.experimental import pallas as pl
from jax.experimental.pallas import tpu as pltpu


# ---------------------------------------------------------------------------
# Kernel
# ---------------------------------------------------------------------------
def classifier_cnn_kernel(x_ref, w1_ref, b1_ref, w2_ref, b2_ref, w3_ref, b3_ref,
                          o_ref, xf_ref, *, bblk, seg_len, dot_dtype):
    """One grid step.

    x_ref : (bblk, nfeat, L)  input block in the original layout (f32)
    w*_ref: per-tap weights (3, Cout, Cin) in `dot_dtype`; b*_ref: (Cout, 1) f32
    w3_ref: (nhid2, 1) f32 (k=1 conv column); b3_ref: (1,) f32 scalar in SMEM
    o_ref : (bblk, 1, L) output block
    xf_ref: (nfeat, bblk*L) f32 VMEM scratch — batch folded into lanes
    """
    L = seg_len
    W = bblk * L

    # ---- fold batch into the lane axis, entirely in VMEM --------------------
    # (replaces the old host-side pad+transpose HBM pass over x)
    for b in range(bblk):
        xf_ref[:, b * L:(b + 1) * L] = x_ref[b]

    # Per-segment edge masks, built once and shared by both k=3 convs.
    pos = lax.broadcasted_iota(jnp.int32, (1, W), 1) % L
    not_first = pos != 0            # t==0     : no left neighbour (zero pad)
    not_last = pos != (L - 1)       # t==L-1   : no right neighbour (zero pad)

    def conv3(h, w_ref, b_ref):
        # Taps h[:, t-1], h[:, t], h[:, t+1] with zero padding at segment edges,
        # as three accumulated MXU dots (no (3C, W) im2col materialization).
        left = jnp.where(not_first, pltpu.roll(h, 1, axis=1), 0.0)
        right = jnp.where(not_last, pltpu.roll(h, W - 1, axis=1), 0.0)
        acc = jnp.dot(w_ref[0], left.astype(dot_dtype),
                      preferred_element_type=jnp.float32)
        acc = acc + jnp.dot(w_ref[1], h.astype(dot_dtype),
                            preferred_element_type=jnp.float32)
        acc = acc + jnp.dot(w_ref[2], right.astype(dot_dtype),
                            preferred_element_type=jnp.float32)
        return acc + b_ref[...]

    h1 = jnp.maximum(conv3(xf_ref[...], w1_ref, b1_ref), 0.0)   # ReLU(layer1)
    # dropout: identity in eval mode
    h2 = jnp.maximum(conv3(h1, w2_ref, b2_ref), 0.0)            # ReLU(layer2)
    # dropout: identity in eval mode
    # TODO(synk): training-mode dropout would need pltpu.prng_seed/prng_random_bits.

    # layer3: k=1 conv, single output channel -> VPU multiply + sublane reduce
    # (a 1-row MXU matmul would be <1% MXU fill).
    y = jnp.sum(h2 * w3_ref[...], axis=0, keepdims=True) + b3_ref[0]   # (1, W)

    # Un-fold lanes back to (bblk, 1, L) and store in the original layout.
    for b in range(bblk):
        o_ref[b] = y[:, b * L:(b + 1) * L].astype(o_ref.dtype)


# ---------------------------------------------------------------------------
# Wrapper helpers
# ---------------------------------------------------------------------------
def _round_up(n, m):
    return -(-n // m) * m


def _tpu_caps():
    """(physical VMEM bytes, # TensorCores per chip) — best-effort, safe fallbacks."""
    vmem_bytes = 64 * 1024 * 1024          # conservative (smallest per-TC VMEM, v7x)
    n_cores = 1                            # v5e/v6e: single TC -> no forced grid split
    try:
        info = pltpu.get_tpu_info()
        vmem_bytes = int(getattr(info, "vmem_capacity_bytes", vmem_bytes)) or vmem_bytes
        for name in ("num_tensorcores", "tensorcores_per_chip", "num_cores",
                     "core_count"):
            val = getattr(info, name, None)
            if val:
                n_cores = int(val)
                break
    except Exception:                      # hardware query is best-effort only
        pass
    return vmem_bytes, n_cores


def _choose_bblk(B, L, nfeat, nhid1, nhid2, vmem_limit_bytes, n_cores):
    """Pick the batch block so W = bblk*L is ~8K lanes (VMEM permitting).

    Only multi-TensorCore chips (v7x) get a forced >=2-step grid; on single-TC
    chips the grid is a serial loop, so one big step is strictly better.
    """
    cin_p = _round_up(max(nfeat, 1), 8)
    # Rough per-lane VMEM footprint: double-buffered x block + folded slab +
    # f32 activations + bf16 tap copies for both conv layers (overestimate OK).
    bytes_per_lane = 4 * (3 * cin_p + nhid1 + nhid2 + 2) + 2 * 3 * (cin_p + nhid1)
    max_lanes = max(128, (vmem_limit_bytes // 3) // max(bytes_per_lane, 1))
    target_lanes = min(8192, max_lanes)
    bblk = max(1, min(B, target_lanes // max(L, 1)))
    if n_cores >= 2 and B >= 2:
        bblk = min(bblk, -(-B // 2))       # >= 2 parallel grid steps for megacore
    return bblk


# ---------------------------------------------------------------------------
# Forward
# ---------------------------------------------------------------------------
def classifier_cnn_forward(x, params, *, bblk=None, dot_dtype=jnp.bfloat16):
    """x: (B, nfeat, L) -> (B, 1, L) float32. params in PyTorch layout."""
    B, nfeat, L = x.shape
    if x.dtype != jnp.float32:
        x = x.astype(jnp.float32)
    w1, b1, w2, b2, w3, b3 = params
    nhid1, nhid2 = w1.shape[0], w2.shape[0]

    vmem_bytes, n_cores = _tpu_caps()
    vmem_limit = int(min(vmem_bytes * 3 // 4, 112 * 1024 * 1024))
    if bblk is None:
        bblk = _choose_bblk(B, L, nfeat, nhid1, nhid2, vmem_limit, n_cores)
    n_blocks = -(-B // bblk)
    Bpad = n_blocks * bblk
    if Bpad != B:                               # rare: only when bblk doesn't divide B
        x = jnp.pad(x, ((0, Bpad - B), (0, 0), (0, 0)))

    # Weight packing (tiny, host-side, once): per-tap (Cout, Cin) slices.
    w1_t = jnp.transpose(w1, (2, 0, 1)).astype(dot_dtype)     # (3, nhid1, nfeat)
    w2_t = jnp.transpose(w2, (2, 0, 1)).astype(dot_dtype)     # (3, nhid2, nhid1)
    b1_c = b1.astype(jnp.float32)[:, None]                    # (nhid1, 1)
    b2_c = b2.astype(jnp.float32)[:, None]                    # (nhid2, 1)
    w3_c = w3[0].astype(jnp.float32)                          # (nhid2, 1)
    b3_s = b3.astype(jnp.float32)                             # (1,) -> SMEM scalar

    kernel = functools.partial(classifier_cnn_kernel, bblk=bblk, seg_len=L,
                               dot_dtype=dot_dtype)

    flops = 2 * Bpad * L * (3 * nfeat * nhid1 + 3 * nhid1 * nhid2 + nhid2)
    bytes_accessed = int(4 * x.size + 4 * Bpad * L
                         + w1_t.size * w1_t.dtype.itemsize
                         + w2_t.size * w2_t.dtype.itemsize
                         + 4 * (b1_c.size + b2_c.size + w3_c.size + b3_s.size))

    out = pl.pallas_call(
        kernel,
        out_shape=jax.ShapeDtypeStruct((Bpad, 1, L), jnp.float32),
        grid_spec=pltpu.PrefetchScalarGridSpec(
            num_scalar_prefetch=0,
            grid=(n_blocks,),
            in_specs=[
                pl.BlockSpec((bblk, nfeat, L), lambda i: (i, 0, 0)),   # x block
                pl.BlockSpec((3, nhid1, nfeat), lambda i: (0, 0, 0)),  # w1 taps
                pl.BlockSpec((nhid1, 1), lambda i: (0, 0)),            # b1
                pl.BlockSpec((3, nhid2, nhid1), lambda i: (0, 0, 0)),  # w2 taps
                pl.BlockSpec((nhid2, 1), lambda i: (0, 0)),            # b2
                pl.BlockSpec((nhid2, 1), lambda i: (0, 0)),            # w3 (k=1 col)
                pl.BlockSpec(memory_space=pltpu.MemorySpace.SMEM),     # b3 scalar
            ],
            out_specs=pl.BlockSpec((bblk, 1, L), lambda i: (i, 0, 0)),
            scratch_shapes=[pltpu.VMEM((nfeat, bblk * L), jnp.float32)],
        ),
        compiler_params=pltpu.CompilerParams(
            dimension_semantics=("parallel",),
            vmem_limit_bytes=vmem_limit),
        cost_estimate=pl.CostEstimate(flops=flops, transcendentals=0,
                                      bytes_accessed=bytes_accessed),
    )(x, w1_t, b1_c, w2_t, b2_c, w3_c, b3_s)

    return out[:B]


# ---------------------------------------------------------------------------
# Init + pure-JAX reference
# ---------------------------------------------------------------------------
def init_params(key, nfeat, nhid1, nhid2):
    """PyTorch Conv1d default init (U[-1/sqrt(fan_in*k), +...]); PyTorch layout."""
    def conv_init(k, cout, cin, ksize):
        bound = 1.0 / jnp.sqrt(cin * ksize)
        kw, kb = jax.random.split(k)
        w = jax.random.uniform(kw, (cout, cin, ksize), jnp.float32, -bound, bound)
        b = jax.random.uniform(kb, (cout,), jnp.float32, -bound, bound)
        return w, b

    k1, k2, k3 = jax.random.split(key, 3)
    w1, b1 = conv_init(k1, nhid1, nfeat, 3)
    w2, b2 = conv_init(k2, nhid2, nhid1, 3)
    w3, b3 = conv_init(k3, 1, nhid2, 1)
    return (w1, b1, w2, b2, w3, b3)


def reference_forward(x, params):
    """Pure-JAX reference (lax.conv) for sanity checking."""
    w1, b1, w2, b2, w3, b3 = params
    dn = ("NCW", "OIW", "NCW")

    def conv1d(h, w, b, pad):
        y = lax.conv_general_dilated(h, w, window_strides=(1,),
                                     padding=[(pad, pad)], dimension_numbers=dn)
        return y + b[None, :, None]

    h = jax.nn.relu(conv1d(x, w1, b1, 1))
    h = jax.nn.relu(conv1d(h, w2, b2, 1))
    return conv1d(h, w3, b3, 0)


if __name__ == "__main__":
    B, nfeat, nhid1, nhid2, L = 8, 4, 32, 16, 128

    key = jax.random.PRNGKey(0)
    kx, kp = jax.random.split(key)
    x = jax.random.normal(kx, (B, nfeat, L), jnp.float32)
    params = init_params(kp, nfeat, nhid1, nhid2)

    ref = jax.block_until_ready(reference_forward(x, params))

    # Exactness check: f32 dot operands must match the f32 reference tightly.
    out_f32 = jax.block_until_ready(
        classifier_cnn_forward(x, params, dot_dtype=jnp.float32))
    assert out_f32.shape == (B, 1, L), out_f32.shape
    assert jnp.allclose(out_f32, ref, atol=1e-4, rtol=1e-4), \
        float(jnp.abs(out_f32 - ref).max())

    # Default (perf) path: bf16 dot operands with f32 accumulation.
    out = jax.block_until_ready(classifier_cnn_forward(x, params))
    assert out.shape == (B, 1, L), out.shape
    err = float(jnp.max(jnp.abs(out - ref)))
    assert err < 5e-2, err

    print("KERNEL_OK")
</pallas_src>

<mosaic_0001>
module attributes {stable_mosaic.version = 11 : i64} {
  func.func @classifier_cnn_kernel(%arg0: i32, %arg1: memref<8x4x128xf32, #tpu.memory_space<vmem>>, %arg2: memref<3x32x4xf32, #tpu.memory_space<vmem>>, %arg3: memref<32x1xf32, #tpu.memory_space<vmem>>, %arg4: memref<3x16x32xf32, #tpu.memory_space<vmem>>, %arg5: memref<16x1xf32, #tpu.memory_space<vmem>>, %arg6: memref<16x1xf32, #tpu.memory_space<vmem>>, %arg7: memref<1xf32, #tpu.memory_space<smem>>, %arg8: memref<8x1x128xf32, #tpu.memory_space<vmem>>, %arg9: memref<4x1024xf32, #tpu.memory_space<vmem>>) attributes {dimension_semantics = [#tpu.dimension_semantics<parallel>], iteration_bounds = array<i64: 1>, scalar_prefetch = 0 : i64, scratch_operands = 1 : i64, tpu.core_type = #tpu.core_type<tc>, window_params = [{transform_indices = @transform_0, window_bounds = array<i64: 8, 4, 128>}, {pipeline_mode = #tpu.pipeline_mode<synchronous>, transform_indices = @transform_1, window_bounds = array<i64: 3, 32, 4>}, {pipeline_mode = #tpu.pipeline_mode<synchronous>, transform_indices = @transform_2, window_bounds = array<i64: 32, 1>}, {pipeline_mode = #tpu.pipeline_mode<synchronous>, transform_indices = @transform_3, window_bounds = array<i64: 3, 16, 32>}, {pipeline_mode = #tpu.pipeline_mode<synchronous>, transform_indices = @transform_4, window_bounds = array<i64: 16, 1>}, {pipeline_mode = #tpu.pipeline_mode<synchronous>, transform_indices = @transform_5, window_bounds = array<i64: 16, 1>}, {transform_indices = @transform_6, window_bounds = array<i64: 1>}, {transform_indices = @transform_7, window_bounds = array<i64: 8, 1, 128>}]} {
    %c0 = arith.constant 0 : index
    %c0_0 = arith.constant 0 : index
    %c0_1 = arith.constant 0 : index
    %0 = vector.load %arg1[%c0, %c0_0, %c0_1] : memref<8x4x128xf32, #tpu.memory_space<vmem>>, vector<1x4x128xf32>
    %1 = vector.shape_cast %0 : vector<1x4x128xf32> to vector<4x128xf32>
    %c0_2 = arith.constant 0 : index
    %c0_3 = arith.constant 0 : index
    %2 = vector.load %arg9[%c0_2, %c0_3] : memref<4x1024xf32, #tpu.memory_space<vmem>>, vector<4x128xf32>
    tpu.vector_store %arg9[%c0_2, %c0_3], %1 {strides = array<i32>} : memref<4x1024xf32, #tpu.memory_space<vmem>>, vector<4x128xf32>,
    %c1 = arith.constant 1 : index
    %c0_4 = arith.constant 0 : index
    %c0_5 = arith.constant 0 : index
    %3 = vector.load %arg1[%c1, %c0_4, %c0_5] : memref<8x4x128xf32, #tpu.memory_space<vmem>>, vector<1x4x128xf32>
    %4 = vector.shape_cast %3 : vector<1x4x128xf32> to vector<4x128xf32>
    %c0_6 = arith.constant 0 : index
    %c128 = arith.constant 128 : index
    %5 = vector.load %arg9[%c0_6, %c128] : memref<4x1024xf32, #tpu.memory_space<vmem>>, vector<4x128xf32>
    tpu.vector_store %arg9[%c0_6, %c128], %4 {strides = array<i32>} : memref<4x1024xf32, #tpu.memory_space<vmem>>, vector<4x128xf32>,
    %c2 = arith.constant 2 : index
    %c0_7 = arith.constant 0 : index
    %c0_8 = arith.constant 0 : index
    %6 = vector.load %arg1[%c2, %c0_7, %c0_8] : memref<8x4x128xf32, #tpu.memory_space<vmem>>, vector<1x4x128xf32>
    %7 = vector.shape_cast %6 : vector<1x4x128xf32> to vector<4x128xf32>
    %c0_9 = arith.constant 0 : index
    %c256 = arith.constant 256 : index
    %8 = vector.load %arg9[%c0_9, %c256] : memref<4x1024xf32, #tpu.memory_space<vmem>>, vector<4x128xf32>
    tpu.vector_store %arg9[%c0_9, %c256], %7 {strides = array<i32>} : memref<4x1024xf32, #tpu.memory_space<vmem>>, vector<4x128xf32>,
    %c3 = arith.constant 3 : index
    %c0_10 = arith.constant 0 : index
    %c0_11 = arith.constant 0 : index
    %9 = vector.load %arg1[%c3, %c0_10, %c0_11] : memref<8x4x128xf32, #tpu.memory_space<vmem>>, vector<1x4x128xf32>
    %10 = vector.shape_cast %9 : vector<1x4x128xf32> to vector<4x128xf32>
    %c0_12 = arith.constant 0 : index
    %c384 = arith.constant 384 : index
    %11 = vector.load %arg9[%c0_12, %c384] : memref<4x1024xf32, #tpu.memory_space<vmem>>, vector<4x128xf32>
    tpu.vector_store %arg9[%c0_12, %c384], %10 {strides = array<i32>} : memref<4x1024xf32, #tpu.memory_space<vmem>>, vector<4x128xf32>,
    %c4 = arith.constant 4 : index
    %c0_13 = arith.constant 0 : index
    %c0_14 = arith.constant 0 : index
    %12 = vector.load %arg1[%c4, %c0_13, %c0_14] : memref<8x4x128xf32, #tpu.memory_space<vmem>>, vector<1x4x128xf32>
    %13 = vector.shape_cast %12 : vector<1x4x128xf32> to vector<4x128xf32>
    %c0_15 = arith.constant 0 : index
    %c512 = arith.constant 512 : index
    %14 = vector.load %arg9[%c0_15, %c512] : memref<4x1024xf32, #tpu.memory_space<vmem>>, vector<4x128xf32>
    tpu.vector_store %arg9[%c0_15, %c512], %13 {strides = array<i32>} : memref<4x1024xf32, #tpu.memory_space<vmem>>, vector<4x128xf32>,
    %c5 = arith.constant 5 : index
    %c0_16 = arith.constant 0 : index
    %c0_17 = arith.constant 0 : index
    %15 = vector.load %arg1[%c5, %c0_16, %c0_17] : memref<8x4x128xf32, #tpu.memory_space<vmem>>, vector<1x4x128xf32>
    %16 = vector.shape_cast %15 : vector<1x4x128xf32> to vector<4x128xf32>
    %c0_18 = arith.constant 0 : index
    %c640 = arith.constant 640 : index
    %17 = vector.load %arg9[%c0_18, %c640] : memref<4x1024xf32, #tpu.memory_space<vmem>>, vector<4x128xf32>
    tpu.vector_store %arg9[%c0_18, %c640], %16 {strides = array<i32>} : memref<4x1024xf32, #tpu.memory_space<vmem>>, vector<4x128xf32>,
    %c6 = arith.constant 6 : index
    %c0_19 = arith.constant 0 : index
    %c0_20 = arith.constant 0 : index
    %18 = vector.load %arg1[%c6, %c0_19, %c0_20] : memref<8x4x128xf32, #tpu.memory_space<vmem>>, vector<1x4x128xf32>
    %19 = vector.shape_cast %18 : vector<1x4x128xf32> to vector<4x128xf32>
    %c0_21 = arith.constant 0 : index
    %c768 = arith.constant 768 : index
    %20 = vector.load %arg9[%c0_21, %c768] : memref<4x1024xf32, #tpu.memory_space<vmem>>, vector<4x128xf32>
    tpu.vector_store %arg9[%c0_21, %c768], %19 {strides = array<i32>} : memref<4x1024xf32, #tpu.memory_space<vmem>>, vector<4x128xf32>,
    %c7 = arith.constant 7 : index
    %c0_22 = arith.constant 0 : index
    %c0_23 = arith.constant 0 : index
    %21 = vector.load %arg1[%c7, %c0_22, %c0_23] : memref<8x4x128xf32, #tpu.memory_space<vmem>>, vector<1x4x128xf32>
    %22 = vector.shape_cast %21 : vector<1x4x128xf32> to vector<4x128xf32>
    %c0_24 = arith.constant 0 : index
    %c896 = arith.constant 896 : index
    %23 = vector.load %arg9[%c0_24, %c896] : memref<4x1024xf32, #tpu.memory_space<vmem>>, vector<4x128xf32>
    tpu.vector_store %arg9[%c0_24, %c896], %22 {strides = array<i32>} : memref<4x1024xf32, #tpu.memory_space<vmem>>, vector<4x128xf32>,
    %24 = tpu.iota {dimensions = array<i32: 1>} : vector<1x1024xi32>
    %c128_i32 = arith.constant 128 : i32
    %c0_i32 = arith.constant 0 : i32
    %25 = arith.cmpi eq, %c128_i32, %c0_i32 : i32
    %c1_i32 = arith.constant 1 : i32
    %26 = arith.select %25, %c1_i32, %c128_i32 : i32
    %27 = vector.broadcast %26 : i32 to vector<1x1024xi32>
    %28 = arith.remsi %24, %27 : vector<1x1024xi32>
    %c0_i32_25 = arith.constant 0 : i32
    %29 = vector.broadcast %c0_i32_25 : i32 to vector<1x1024xi32>
    %30 = arith.cmpi ne, %28, %29 : vector<1x1024xi32>
    %c0_i32_26 = arith.constant 0 : i32
    %31 = vector.broadcast %c0_i32_26 : i32 to vector<1x1024xi32>
    %32 = arith.cmpi slt, %28, %31 : vector<1x1024xi32>
    %c0_i32_27 = arith.constant 0 : i32
    %33 = arith.cmpi slt, %26, %c0_i32_27 : i32
    %34 = vector.broadcast %33 : i1 to vector<1x1024xi1>
    %35 = vector.broadcast %34 : vector<1x1024xi1> to vector<1x1024xi1>
    %36 = arith.xori %32, %35 : vector<1x1024xi1>
    %37 = arith.andi %36, %30 : vector<1x1024xi1>
    %38 = vector.broadcast %26 : i32 to vector<1x1024xi32>
    %39 = arith.addi %28, %38 : vector<1x1024xi32>
    %40 = arith.select %37, %39, %28 : vector<1x1024xi1>, vector<1x1024xi32>
    %c0_i32_28 = arith.constant 0 : i32
    %41 = vector.broadcast %c0_i32_28 : i32 to vector<1x1024xi32>
    %42 = arith.cmpi ne, %40, %41 : vector<1x1024xi32>
    %c127_i32 = arith.constant 127 : i32
    %43 = vector.broadcast %c127_i32 : i32 to vector<1x1024xi32>
    %44 = arith.cmpi ne, %40, %43 : vector<1x1024xi32>
    %c0_29 = arith.constant 0 : index
    %c0_30 = arith.constant 0 : index
    %45 = vector.load %arg9[%c0_29, %c0_30] : memref<4x1024xf32, #tpu.memory_space<vmem>>, vector<4x1024xf32>
    %c1_i32_31 = arith.constant 1 : i32
    %46 = tpu.dynamic_rotate %45 by %c1_i32_31 dim 1 : vector<4x1024xf32>, i32 -> vector<4x1024xf32>
    %cst = arith.constant 0.000000e+00 : f32
    %47 = vector.shape_cast %42 : vector<1x1024xi1> to vector<1x1024xi1>
    %48 = vector.broadcast %47 : vector<1x1024xi1> to vector<4x1024xi1>
    %49 = vector.broadcast %cst : f32 to vector<4x1024xf32>
    %50 = arith.select %48, %46, %49 : vector<4x1024xi1>, vector<4x1024xf32>
    %c1023_i32 = arith.constant 1023 : i32
    %51 = tpu.dynamic_rotate %45 by %c1023_i32 dim 1 : vector<4x1024xf32>, i32 -> vector<4x1024xf32>
    %cst_32 = arith.constant 0.000000e+00 : f32
    %52 = vector.shape_cast %44 : vector<1x1024xi1> to vector<1x1024xi1>
    %53 = vector.broadcast %52 : vector<1x1024xi1> to vector<4x1024xi1>
    %54 = vector.broadcast %cst_32 : f32 to vector<4x1024xf32>
    %55 = arith.select %53, %51, %54 : vector<4x1024xi1>, vector<4x1024xf32>
    %c0_33 = arith.constant 0 : index
    %c0_34 = arith.constant 0 : index
    %c0_35 = arith.constant 0 : index
    %56 = vector.load %arg2[%c0_33, %c0_34, %c0_35] : memref<3x32x4xf32, #tpu.memory_space<vmem>>, vector<1x32x4xf32>
    %57 = vector.shape_cast %56 : vector<1x32x4xf32> to vector<32x4xf32>
    %cst_36 = arith.constant dense<0.000000e+00> : vector<32x1024xf32>
    %58 = tpu.matmul %57, %50, %cst_36 {dimension_numbers = #tpu.dot_dimension_numbers<[1], [0], [0], [1], [0, 0, 1, 1], [], []>} : vector<32x4xf32>, vector<4x1024xf32>, vector<32x1024xf32> -> vector<32x1024xf32>
    %c1_37 = arith.constant 1 : index
    %c0_38 = arith.constant 0 : index
    %c0_39 = arith.constant 0 : index
    %59 = vector.load %arg2[%c1_37, %c0_38, %c0_39] : memref<3x32x4xf32, #tpu.memory_space<vmem>>, vector<1x32x4xf32>
    %60 = vector.shape_cast %59 : vector<1x32x4xf32> to vector<32x4xf32>
    %cst_40 = arith.constant dense<0.000000e+00> : vector<32x1024xf32>
    %61 = tpu.matmul %60, %45, %cst_40 {dimension_numbers = #tpu.dot_dimension_numbers<[1], [0], [0], [1], [0, 0, 1, 1], [], []>} : vector<32x4xf32>, vector<4x1024xf32>, vector<32x1024xf32> -> vector<32x1024xf32>
    %62 = arith.addf %58, %61 : vector<32x1024xf32>
    %c2_41 = arith.constant 2 : index
    %c0_42 = arith.constant 0 : index
    %c0_43 = arith.constant 0 : index
    %63 = vector.load %arg2[%c2_41, %c0_42, %c0_43] : memref<3x32x4xf32, #tpu.memory_space<vmem>>, vector<1x32x4xf32>
    %64 = vector.shape_cast %63 : vector<1x32x4xf32> to vector<32x4xf32>
    %cst_44 = arith.constant dense<0.000000e+00> : vector<32x1024xf32>
    %65 = tpu.matmul %64, %55, %cst_44 {dimension_numbers = #tpu.dot_dimension_numbers<[1], [0], [0], [1], [0, 0, 1, 1], [], []>} : vector<32x4xf32>, vector<4x1024xf32>, vector<32x1024xf32> -> vector<32x1024xf32>
    %66 = arith.addf %62, %65 : vector<32x1024xf32>
    %c0_45 = arith.constant 0 : index
    %c0_46 = arith.constant 0 : index
    %67 = vector.load %arg3[%c0_45, %c0_46] : memref<32x1xf32, #tpu.memory_space<vmem>>, vector<32x1xf32>
    %68 = vector.broadcast %67 : vector<32x1xf32> to vector<32x1024xf32>
    %69 = arith.addf %66, %68 : vector<32x1024xf32>
    %cst_47 = arith.constant 0.000000e+00 : f32
    %70 = vector.broadcast %cst_47 : f32 to vector<32x1024xf32>
    %71 = arith.maximumf %69, %70 : vector<32x1024xf32>
    %c1_i32_48 = arith.constant 1 : i32
    %72 = tpu.dynamic_rotate %71 by %c1_i32_48 dim 1 : vector<32x1024xf32>, i32 -> vector<32x1024xf32>
    %cst_49 = arith.constant 0.000000e+00 : f32
    %73 = vector.shape_cast %42 : vector<1x1024xi1> to vector<1x1024xi1>
    %74 = vector.broadcast %73 : vector<1x1024xi1> to vector<32x1024xi1>
    %75 = vector.broadcast %cst_49 : f32 to vector<32x1024xf32>
    %76 = arith.select %74, %72, %75 : vector<32x1024xi1>, vector<32x1024xf32>
    %c1023_i32_50 = arith.constant 1023 : i32
    %77 = tpu.dynamic_rotate %71 by %c1023_i32_50 dim 1 : vector<32x1024xf32>, i32 -> vector<32x1024xf32>
    %cst_51 = arith.constant 0.000000e+00 : f32
    %78 = vector.shape_cast %44 : vector<1x1024xi1> to vector<1x1024xi1>
    %79 = vector.broadcast %78 : vector<1x1024xi1> to vector<32x1024xi1>
    %80 = vector.broadcast %cst_51 : f32 to vector<32x1024xf32>
    %81 = arith.select %79, %77, %80 : vector<32x1024xi1>, vector<32x1024xf32>
    %c0_52 = arith.constant 0 : index
    %c0_53 = arith.constant 0 : index
    %c0_54 = arith.constant 0 : index
    %82 = vector.load %arg4[%c0_52, %c0_53, %c0_54] : memref<3x16x32xf32, #tpu.memory_space<vmem>>, vector<1x16x32xf32>
    %83 = vector.shape_cast %82 : vector<1x16x32xf32> to vector<16x32xf32>
    %cst_55 = arith.constant dense<0.000000e+00> : vector<16x1024xf32>
    %84 = tpu.matmul %83, %76, %cst_55 {dimension_numbers = #tpu.dot_dimension_numbers<[1], [0], [0], [1], [0, 0, 1, 1], [], []>} : vector<16x32xf32>, vector<32x1024xf32>, vector<16x1024xf32> -> vector<16x1024xf32>
    %c1_56 = arith.constant 1 : index
    %c0_57 = arith.constant 0 : index
    %c0_58 = arith.constant 0 : index
    %85 = vector.load %arg4[%c1_56, %c0_57, %c0_58] : memref<3x16x32xf32, #tpu.memory_space<vmem>>, vector<1x16x32xf32>
    %86 = vector.shape_cast %85 : vector<1x16x32xf32> to vector<16x32xf32>
    %cst_59 = arith.constant dense<0.000000e+00> : vector<16x1024xf32>
    %87 = tpu.matmul %86, %71, %cst_59 {dimension_numbers = #tpu.dot_dimension_numbers<[1], [0], [0], [1], [0, 0, 1, 1], [], []>} : vector<16x32xf32>, vector<32x1024xf32>, vector<16x1024xf32> -> vector<16x1024xf32>
    %88 = arith.addf %84, %87 : vector<16x1024xf32>
    %c2_60 = arith.constant 2 : index
    %c0_61 = arith.constant 0 : index
    %c0_62 = arith.constant 0 : index
    %89 = vector.load %arg4[%c2_60, %c0_61, %c0_62] : memref<3x16x32xf32, #tpu.memory_space<vmem>>, vector<1x16x32xf32>
    %90 = vector.shape_cast %89 : vector<1x16x32xf32> to vector<16x32xf32>
    %cst_63 = arith.constant dense<0.000000e+00> : vector<16x1024xf32>
    %91 = tpu.matmul %90, %81, %cst_63 {dimension_numbers = #tpu.dot_dimension_numbers<[1], [0], [0], [1], [0, 0, 1, 1], [], []>} : vector<16x32xf32>, vector<32x1024xf32>, vector<16x1024xf32> -> vector<16x1024xf32>
    %92 = arith.addf %88, %91 : vector<16x1024xf32>
    %c0_64 = arith.constant 0 : index
    %c0_65 = arith.constant 0 : index
    %93 = vector.load %arg5[%c0_64, %c0_65] : memref<16x1xf32, #tpu.memory_space<vmem>>, vector<16x1xf32>
    %94 = vector.broadcast %93 : vector<16x1xf32> to vector<16x1024xf32>
    %95 = arith.addf %92, %94 : vector<16x1024xf32>
    %cst_66 = arith.constant 0.000000e+00 : f32
    %96 = vector.broadcast %cst_66 : f32 to vector<16x1024xf32>
    %97 = arith.maximumf %95, %96 : vector<16x1024xf32>
    %c0_67 = arith.constant 0 : index
    %c0_68 = arith.constant 0 : index
    %98 = vector.load %arg6[%c0_67, %c0_68] : memref<16x1xf32, #tpu.memory_space<vmem>>, vector<16x1xf32>
    %99 = vector.broadcast %98 : vector<16x1xf32> to vector<16x1024xf32>
    %100 = arith.mulf %97, %99 : vector<16x1024xf32>
    %cst_69 = arith.constant dense<0.000000e+00> : vector<1024xf32>
    %101 = vector.multi_reduction <add>, %100, %cst_69 [0] : vector<16x1024xf32> to vector<1024xf32>
    %102 = vector.shape_cast %101 : vector<1024xf32> to vector<1x1024xf32>
    %c0_70 = arith.constant 0 : index
    %103 = memref.load %arg7[%c0_70] : memref<1xf32, #tpu.memory_space<smem>>
    %104 = vector.broadcast %103 : f32 to vector<1x1024xf32>
    %105 = arith.addf %102, %104 : vector<1x1024xf32>
    %106 = vector.extract_strided_slice %105 {offsets = [0, 0], sizes = [1, 128], strides = [1, 1]} : vector<1x1024xf32> to vector<1x128xf32>
    %c0_71 = arith.constant 0 : index
    %c0_72 = arith.constant 0 : index
    %c0_73 = arith.constant 0 : index
    %107 = vector.load %arg8[%c0_71, %c0_72, %c0_73] : memref<8x1x128xf32, #tpu.memory_space<vmem>>, vector<1x1x128xf32>
    %108 = vector.shape_cast %107 : vector<1x1x128xf32> to vector<1x128xf32>
    %109 = vector.shape_cast %106 : vector<1x128xf32> to vector<1x1x128xf32>
    tpu.vector_store %arg8[%c0_71, %c0_72, %c0_73], %109 {strides = array<i32>} : memref<8x1x128xf32, #tpu.memory_space<vmem>>, vector<1x1x128xf32>,
    %110 = vector.extract_strided_slice %105 {offsets = [0, 128], sizes = [1, 128], strides = [1, 1]} : vector<1x1024xf32> to vector<1x128xf32>
    %c1_74 = arith.constant 1 : index
    %c0_75 = arith.constant 0 : index
    %c0_76 = arith.constant 0 : index
    %111 = vector.load %arg8[%c1_74, %c0_75, %c0_76] : memref<8x1x128xf32, #tpu.memory_space<vmem>>, vector<1x1x128xf32>
    %112 = vector.shape_cast %111 : vector<1x1x128xf32> to vector<1x128xf32>
    %113 = vector.shape_cast %110 : vector<1x128xf32> to vector<1x1x128xf32>
    tpu.vector_store %arg8[%c1_74, %c0_75, %c0_76], %113 {strides = array<i32>} : memref<8x1x128xf32, #tpu.memory_space<vmem>>, vector<1x1x128xf32>,
    %114 = vector.extract_strided_slice %105 {offsets = [0, 256], sizes = [1, 128], strides = [1, 1]} : vector<1x1024xf32> to vector<1x128xf32>
    %c2_77 = arith.constant 2 : index
    %c0_78 = arith.constant 0 : index
    %c0_79 = arith.constant 0 : index
    %115 = vector.load %arg8[%c2_77, %c0_78, %c0_79] : memref<8x1x128xf32, #tpu.memory_space<vmem>>, vector<1x1x128xf32>
    %116 = vector.shape_cast %115 : vector<1x1x128xf32> to vector<1x128xf32>
    %117 = vector.shape_cast %114 : vector<1x128xf32> to vector<1x1x128xf32>
    tpu.vector_store %arg8[%c2_77, %c0_78, %c0_79], %117 {strides = array<i32>} : memref<8x1x128xf32, #tpu.memory_space<vmem>>, vector<1x1x128xf32>,
    %118 = vector.extract_strided_slice %105 {offsets = [0, 384], sizes = [1, 128], strides = [1, 1]} : vector<1x1024xf32> to vector<1x128xf32>
    %c3_80 = arith.constant 3 : index
    %c0_81 = arith.constant 0 : index
    %c0_82 = arith.constant 0 : index
    %119 = vector.load %arg8[%c3_80, %c0_81, %c0_82] : memref<8x1x128xf32, #tpu.memory_space<vmem>>, vector<1x1x128xf32>
    %120 = vector.shape_cast %119 : vector<1x1x128xf32> to vector<1x128xf32>
    %121 = vector.shape_cast %118 : vector<1x128xf32> to vector<1x1x128xf32>
    tpu.vector_store %arg8[%c3_80, %c0_81, %c0_82], %121 {strides = array<i32>} : memref<8x1x128xf32, #tpu.memory_space<vmem>>, vector<1x1x128xf32>,
    %122 = vector.extract_strided_slice %105 {offsets = [0, 512], sizes = [1, 128], strides = [1, 1]} : vector<1x1024xf32> to vector<1x128xf32>
    %c4_83 = arith.constant 4 : index
    %c0_84 = arith.constant 0 : index
    %c0_85 = arith.constant 0 : index
    %123 = vector.load %arg8[%c4_83, %c0_84, %c0_85] : memref<8x1x128xf32, #tpu.memory_space<vmem>>, vector<1x1x128xf32>
    %124 = vector.shape_cast %123 : vector<1x1x128xf32> to vector<1x128xf32>
    %125 = vector.shape_cast %122 : vector<1x128xf32> to vector<1x1x128xf32>
    tpu.vector_store %arg8[%c4_83, %c0_84, %c0_85], %125 {strides = array<i32>} : memref<8x1x128xf32, #tpu.memory_space<vmem>>, vector<1x1x128xf32>,
    %126 = vector.extract_strided_slice %105 {offsets = [0, 640], sizes = [1, 128], strides = [1, 1]} : vector<1x1024xf32> to vector<1x128xf32>
    %c5_86 = arith.constant 5 : index
    %c0_87 = arith.constant 0 : index
    %c0_88 = arith.constant 0 : index
    %127 = vector.load %arg8[%c5_86, %c0_87, %c0_88] : memref<8x1x128xf32, #tpu.memory_space<vmem>>, vector<1x1x128xf32>
    %128 = vector.shape_cast %127 : vector<1x1x128xf32> to vector<1x128xf32>
    %129 = vector.shape_cast %126 : vector<1x128xf32> to vector<1x1x128xf32>
    tpu.vector_store %arg8[%c5_86, %c0_87, %c0_88], %129 {strides = array<i32>} : memref<8x1x128xf32, #tpu.memory_space<vmem>>, vector<1x1x128xf32>,
    %130 = vector.extract_strided_slice %105 {offsets = [0, 768], sizes = [1, 128], strides = [1, 1]} : vector<1x1024xf32> to vector<1x128xf32>
    %c6_89 = arith.constant 6 : index
    %c0_90 = arith.constant 0 : index
    %c0_91 = arith.constant 0 : index
    %131 = vector.load %arg8[%c6_89, %c0_90, %c0_91] : memref<8x1x128xf32, #tpu.memory_space<vmem>>, vector<1x1x128xf32>
    %132 = vector.shape_cast %131 : vector<1x1x128xf32> to vector<1x128xf32>
    %133 = vector.shape_cast %130 : vector<1x128xf32> to vector<1x1x128xf32>
    tpu.vector_store %arg8[%c6_89, %c0_90, %c0_91], %133 {strides = array<i32>} : memref<8x1x128xf32, #tpu.memory_space<vmem>>, vector<1x1x128xf32>,
    %134 = vector.extract_strided_slice %105 {offsets = [0, 896], sizes = [1, 128], strides = [1, 1]} : vector<1x1024xf32> to vector<1x128xf32>
    %c7_92 = arith.constant 7 : index
    %c0_93 = arith.constant 0 : index
    %c0_94 = arith.constant 0 : index
    %135 = vector.load %arg8[%c7_92, %c0_93, %c0_94] : memref<8x1x128xf32, #tpu.memory_space<vmem>>, vector<1x1x128xf32>
    %136 = vector.shape_cast %135 : vector<1x1x128xf32> to vector<1x128xf32>
    %137 = vector.shape_cast %134 : vector<1x128xf32> to vector<1x1x128xf32>
    tpu.vector_store %arg8[%c7_92, %c0_93, %c0_94], %137 {strides = array<i32>} : memref<8x1x128xf32, #tpu.memory_space<vmem>>, vector<1x1x128xf32>,
    return
  }
  func.func @transform_0(%arg0: i32) -> (i32, i32, i32) {
    %c0_i32 = arith.constant 0 : i32
    %c0_i32_0 = arith.constant 0 : i32
    %c0_i32_1 = arith.constant 0 : i32
    return %arg0, %c0_i32, %c0_i32_0 : i32, i32, i32
  }
  func.func @transform_1(%arg0: i32) -> (i32, i32, i32) {
    %c0_i32 = arith.constant 0 : i32
    %c0_i32_0 = arith.constant 0 : i32
    %c0_i32_1 = arith.constant 0 : i32
    %c0_i32_2 = arith.constant 0 : i32
    return %c0_i32, %c0_i32_0, %c0_i32_1 : i32, i32, i32
  }
  func.func @transform_2(%arg0: i32) -> (i32, i32) {
    %c0_i32 = arith.constant 0 : i32
    %c0_i32_0 = arith.constant 0 : i32
    %c0_i32_1 = arith.constant 0 : i32
    return %c0_i32, %c0_i32_0 : i32, i32
  }
  func.func @transform_3(%arg0: i32) -> (i32, i32, i32) {
    %c0_i32 = arith.constant 0 : i32
    %c0_i32_0 = arith.constant 0 : i32
    %c0_i32_1 = arith.constant 0 : i32
    %c0_i32_2 = arith.constant 0 : i32
    return %c0_i32, %c0_i32_0, %c0_i32_1 : i32, i32, i32
  }
  func.func @transform_4(%arg0: i32) -> (i32, i32) {
    %c0_i32 = arith.constant 0 : i32
    %c0_i32_0 = arith.constant 0 : i32
    %c0_i32_1 = arith.constant 0 : i32
    return %c0_i32, %c0_i32_0 : i32, i32
  }
  func.func @transform_5(%arg0: i32) -> (i32, i32) {
    %c0_i32 = arith.constant 0 : i32
    %c0_i32_0 = arith.constant 0 : i32
    %c0_i32_1 = arith.constant 0 : i32
    return %c0_i32, %c0_i32_0 : i32, i32
  }
  func.func @transform_6(%arg0: i32) -> i32 {
    %c0_i32 = arith.constant 0 : i32
    %c0_i32_0 = arith.constant 0 : i32
    return %c0_i32 : i32
  }
  func.func @transform_7(%arg0: i32) -> (i32, i32, i32) {
    %c0_i32 = arith.constant 0 : i32
    %c0_i32_0 = arith.constant 0 : i32
    %c0_i32_1 = arith.constant 0 : i32
    return %arg0, %c0_i32, %c0_i32_0 : i32, i32, i32
  }
}

</mosaic_0001>

<bundles_post_ra>
// kernel: tpu_custom_call.1
= control target key start
LH: loop header
LB: loop body
LE: loop exit
PB: predicated region body
PF: predicated region fallthrough
CT: control target
= control target key end

     0   :  { %v3581_v4 = vmov 0.0   ;;  %s4769_s0 = inlined_call_operand.vmem [shape: f32[8,4,128], index: 0, kind: input, shape index: {}]   ;;  %s4770_s1 = inlined_call_operand.vmem [shape: f32[3,32,4], index: 1, kind: input, shape index: {}]   ;;  %s4771_s2 = inlined_call_operand.vmem [shape: f32[32,1], index: 2, kind: input, shape index: {}]   ;;  %s4772_s3 = inlined_call_operand.vmem [shape: f32[3,16,32], index: 3, kind: input, shape index: {}]   ;;  %s4773_s4 = inlined_call_operand.vmem [shape: f32[16,1], index: 4, kind: input, shape index: {}]   ;;  %s4774_s5 = inlined_call_operand.vmem [shape: f32[16,1], index: 5, kind: input, shape index: {}]   ;;  %s4775_s6 = inlined_call_operand.<no memory space> [shape: f32[1], index: 6, kind: input, shape index: {}]   ;;  %s4776_s7 = inlined_call_operand.hbm [shape: f32[8,1,128], index: 7, kind: output, shape index: {}]  }
   0x1   :  { %v2983_v0 = vld [vmem:[%s4769_s0 + $0x8] sm:$0xff]   ;;  %v28_v1 = vld [vmem:[%s4769_s0] sm:$0xff]   ;;  %v2987_v2 = vld [vmem:[%s4769_s0 + $0x18] sm:$0xff]   ;;  %478 = vmatprep.mubr.f32.mxu1 %v3581_v4  ;;  %389 = vmatprep.mubr.f32.mxu0 %v3581_v4 }
   0x2   :  { %35 = vst [vmem:[#allocation2 + $0x8] sm:$0xff] %v2983_v0   ;;  %29 = vst [vmem:[#allocation2] sm:$0xff] %v28_v1   ;;  %v2985_v3 = vld [vmem:[%s4769_s0 + $0x10] sm:$0xff]  }
   0x3   :  { %47 = vst [vmem:[#allocation2 + $0x18] sm:$0xff] %v2987_v2   ;;  %41 = vst [vmem:[#allocation2 + $0x10] sm:$0xff] %v2985_v3  }
   0x4   :  { %13 = vsyncpa [#allocation5], 0  ;;  %vm4780_vm0 = vcmask 1043456   ;;  %s3582_s9 = smov 1   ;;  %v2989_v10 = vld [vmem:[%s4770_s1 + $0x20] sm:$0xff]  ;;  %vm295_vm1 = vcmask 31744   ;;  %v51_v22 = vlaneseq }
   0x5   :  { %v2990_v13 = vld [vmem:[%s4770_s1 + $0x28] sm:$0xff]  ;;  %v2991_v15 = vld [vmem:[%s4770_s1 + $0x30] sm:$0xff]  ;;  %v2992_v16 = vld [vmem:[%s4770_s1 + $0x38] sm:$0xff]  ;;  %s3583_s17 = smov 127   ;;  %v3584_v19 = vmov 0  }
   0x6   :  { %v1502_v17 = vld [vmem:[%s4771_s2] sm:$0xff]  ;;  %v1503_v18 = vld [vmem:[%s4771_s2 + $0x8] sm:$0xff]  ;;  %3391 = vset.pattern.permute.xlu0 %v3584_v19  ;;  %3392 = vset.pattern.permute.xlu1 %v3584_v19  ;;  %v1504_v20 = vld [vmem:[%s4771_s2 + $0x10] sm:$0xff]  ;;  %v3721_v23 = vand.u32 127, %v51_v22 }
   0x7   :  { %v1505_v21 = vld [vmem:[%s4771_s2 + $0x18] sm:$0xff]  ;;  %v3776_v45 = vld [vmem:[%s4770_s1] sm:$0xff]  ;;  %v3807_v57 = vld [vmem:[%s4770_s1 + $0x8] sm:$0xff] }
   0x8   :  { %v3724_v24 = vadd.s32 384, %v3721_v23  ;;  %v3727_v25 = vadd.s32 256, %v3721_v23  ;;  %v3730_v26 = vadd.s32 128, %v3721_v23  ;;  %vm4778_vm2 = vcmp.lt.s32.totalorder %v3721_v23, 1  ;;  %v288_v3 = vld [vmem:[%s4770_s1 + $0x10] sm:$0xff] }
   0x9   :  { %v173_v5 = vld [vmem:[#allocation2 + $0x8] sm:$0xff]  ;;  %v172_v6 = vld [vmem:[#allocation2] sm:$0xff]  ;;  %v3737_v31 = vadd.s32 896, %v3721_v23  ;;  %v3746_v34 = vadd.s32 768, %v3721_v23  ;;  %v3757_v38 = vadd.s32 512, %v3721_v23  ;;  %v3769_v42 = vadd.s32 640, %v3721_v23 }
   0xa   :  { %192 = vrot.lane.b32.xlu0 %v173_v5, %s3582_s9  ;;  %v180_v7 = vcombine.high %v172_v6, %v172_v6  ;;  %v181_v8 = vcombine.high %v173_v5, %v173_v5  ;;  %v175_v9 = vld [vmem:[#allocation2 + $0x18] sm:$0xff]  ;;  %v174_v12 = vld [vmem:[#allocation2 + $0x10] sm:$0xff]  ;;  %v85_v27 = vand.u32 127, %v3724_v24  ;;  %v78_v29 = vand.u32 127, %v3727_v25 }
   0xb   :  { %v183_v11 = vcombine.high %v175_v9, %v175_v9  ;;  %v182_v14 = vcombine.high %v174_v12, %v174_v12  ;;  %v71_v30 = vand.u32 127, %v3730_v26  ;;  %v113_v41 = vand.u32 127, %v3737_v31 }
   0xc   :  { %190 = vrot.lane.b32.xlu1 %v180_v7, %s3582_s9  ;;  %2999 = vmatprep.subr.msk.mxu1 %vm4780_vm0, %v181_v8  ;;  %vm3741_vm3 = vcmp.ne.s32.totalorder %v85_v27, 0  ;;  %vm3750_vm4 = vcmp.ne.s32.totalorder %v78_v29, 0  ;;  %vm4777_vm6 = vcmp.ne.s32.totalorder %v3721_v23, 0  ;;  %v106_v48 = vand.u32 127, %v3746_v34 }
   0xd   :  { %3000 = vmatpush1.msk.msra.mxu1 %vm4780_vm0, %v173_v5  ;;  %2993 = vmatprep.subr.msk.mxu0 %vm4780_vm0, %v180_v7  ;;  %vm3763_vm5 = vcmp.ne.s32.totalorder %v71_v30, 0  ;;  %vm3795_vm7 = vcmp.ne.s32.totalorder %v113_v41, 0  ;;  %v92_v53 = vand.u32 127, %v3757_v38  ;;  %v99_v54 = vand.u32 127, %v3769_v42 }
   0xe   :  { %194 = vrot.lane.b32.xlu0 %v181_v8, %s3582_s9  ;;  %3001 = vmatmul.mubr.msk.f32.vlgmr.msra.gmra.mrb[0].mxu1 %vm295_vm1, %v2989_v10  ;;  %vm3814_vm8 = vcmp.ne.s32.totalorder %v106_v48, 0  ;;  %vm4785_vm11 = vcmp.lt.s32.totalorder %v3721_v23, 127  ;;  %vm3862_vm12 = vcmp.ne.s32.totalorder %v85_v27, 127  ;;  %vm3879_vm13 = vcmp.ne.s32.totalorder %v78_v29, 127 }
   0xf   :  { %2994 = vmatpush1.msk.msra.mxu0 %vm4780_vm0, %v172_v6  ;;  %484 = vmatprep.mubr.f32.mxu1 %v3581_v4  ;;  %vm3829_vm9 = vcmp.ne.s32.totalorder %v92_v53, 0  ;;  %vm3835_vm10 = vcmp.ne.s32.totalorder %v99_v54, 0  ;;  %vm3887_vm14 = vcmp.ne.s32.totalorder %v71_v30, 127  ;;  %vm4779_vm15 = vcmp.ne.s32.totalorder %v3721_v23, 127 }
  0x10   :  { %188 = vrot.lane.b32.xlu1 %v172_v6, %s3582_s9  ;;  %2995 = vmatmul.mubr.msk.f32.vlgmr.msra.gmra.mrb[0].mxu0 %vm295_vm1, %v2989_v10  ;;  %v4811_v25 = vmov 0 }
  0x11   :  { %395 = vmatprep.mubr.f32.mxu0 %v3581_v4  ;;  %3011 = vmatprep.subr.msk.mxu1 %vm4780_vm0, %v183_v11 }
  0x12   :  { %202 = vrot.lane.b32.xlu0 %v183_v11, %s3582_s9  ;;  %3002 = vmatmul.mubr.msk.f32.gmra.mrb[2].mxu1 %vm295_vm1, %v2990_v13 }
  0x13   :  { %490 = vmatprep.mubr.f32.mxu1 %v3581_v4  ;;  %3012 = vmatpush1.msk.msra.mxu1 %vm4780_vm0, %v175_v9 }
  0x14   :  { %200 = vrot.lane.b32.xlu1 %v175_v9, %s3582_s9  ;;  %2996 = vmatmul.mubr.msk.f32.gmra.mrb[2].mxu0 %vm295_vm1, %v2990_v13 }
  0x15   :  { %401 = vmatprep.mubr.f32.mxu0 %v3581_v4  ;;  %3005 = vmatprep.subr.msk.mxu0 %vm4780_vm0, %v182_v14 }
  0x16   :  { %198 = vrot.lane.b32.xlu0 %v182_v14, %s3582_s9  ;;  %3003 = vmatmul.mubr.msk.f32.gmra.mrb[4].mxu1 %vm295_vm1, %v2991_v15 }
  0x17   :  { %496 = vmatprep.mubr.f32.mxu1 %v3581_v4  ;;  %3006 = vmatpush1.msk.msra.mxu0 %vm4780_vm0, %v174_v12 }
  0x18   :  { %196 = vrot.lane.b32.xlu1 %v174_v12, %s3582_s9  ;;  %2997 = vmatmul.mubr.msk.f32.gmra.mrb[4].mxu0 %vm295_vm1, %v2991_v15 }
  0x19   :  { %407 = vmatprep.mubr.f32.mxu0 %v3581_v4 }
  0x1a   :  { %243 = vrot.lane.b32.xlu0 %v181_v8, %s3583_s17  ;;  %3004 = vmatmul.mubr.msk.f32.gmra.mrb[6].mxu1 %vm295_vm1, %v2992_v16 }
  0x1b   :  { %656 = vmatprep.mubr.f32.mxu1 %v3581_v4 }
  0x1c   :  { %245 = vrot.lane.b32.xlu1 %v174_v12, %s3583_s17  ;;  %2998 = vmatmul.mubr.msk.f32.gmra.mrb[6].mxu0 %vm295_vm1, %v2992_v16 }
  0x1d   :  { %567 = vmatprep.mubr.f32.mxu0 %v3581_v4 }
  0x1e   :  { %241 = vrot.lane.b32.xlu0 %v173_v5, %s3583_s17  ;;  %3013 = vmatmul.mubr.msk.f32.vlgmr.msra.gmra.mrb[8].mxu1 %vm295_vm1, %v2989_v10 }
  0x1f   :  { %662 = vmatprep.mubr.f32.mxu1 %v3581_v4 }
  0x20   :  { %239 = vrot.lane.b32.xlu1 %v180_v7, %s3583_s17  ;;  %3007 = vmatmul.mubr.msk.f32.vlgmr.msra.gmra.mrb[8].mxu0 %vm295_vm1, %v2989_v10 }
  0x21   :  { %573 = vmatprep.mubr.f32.mxu0 %v3581_v4 }
  0x22   :  { %237 = vrot.lane.b32.xlu0 %v172_v6, %s3583_s17  ;;  %3014 = vmatmul.mubr.msk.f32.gmra.mrb[10].mxu1 %vm295_vm1, %v2990_v13 }
  0x23   :  { %668 = vmatprep.mubr.f32.mxu1 %v3581_v4 }
  0x24   :  { %251 = vrot.lane.b32.xlu1 %v183_v11, %s3583_s17  ;;  %3008 = vmatmul.mubr.msk.f32.gmra.mrb[10].mxu0 %vm295_vm1, %v2990_v13  ;;  %v289_v11 = vld [vmem:[%s4770_s1 + $0x18] sm:$0xff] }
  0x25   :  { %579 = vmatprep.mubr.f32.mxu0 %v3581_v4 }
  0x26   :  { %249 = vrot.lane.b32.xlu0 %v175_v9, %s3583_s17  ;;  %3015 = vmatmul.mubr.msk.f32.gmra.mrb[12].mxu1 %vm295_vm1, %v2991_v15 }
  0x27   :  { %674 = vmatprep.mubr.f32.mxu1 %v3581_v4 }
  0x28   :  { %247 = vrot.lane.b32.xlu1 %v182_v14, %s3583_s17  ;;  %3009 = vmatmul.mubr.msk.f32.gmra.mrb[12].mxu0 %vm295_vm1, %v2991_v15 }
  0x29   :  { %585 = vmatprep.mubr.f32.mxu0 %v3581_v4 }
  0x2a   :  { %3016 = vmatmul.mubr.msk.f32.gmra.mrb[14].mxu1 %vm295_vm1, %v2992_v16  ;;  %1508 = vperm.xlu0 %3391, %v1502_v17  }
  0x2b   :  { %870 = vmatprep.mubr.f32.mxu1 %v3581_v4 }
  0x2c   :  { %3010 = vmatmul.mubr.msk.f32.gmra.mrb[14].mxu0 %vm295_vm1, %v2992_v16  ;;  %1513 = vperm.xlu1 %3392, %v1503_v18  }
  0x2d   :  { %781 = vmatprep.mubr.f32.mxu0 %v3581_v4 }
  0x2e   :  { %1523 = vperm.xlu0 %3391, %v1505_v21  }
  0x30   :  { %1518 = vperm.xlu1 %3392, %v1504_v20  }
  0x7c   :  { %v193_v28 = vpop.permute.xlu0 %192 }
  0x7e   :  { %v191_v32 = vpop.permute.xlu1 %190 }
  0x7f   :  { %v210_v36 = vsel %vm4778_vm2, %v191_v32, %v193_v28 }
  0x80   :  { %v195_v37 = vpop.permute.xlu0 %194  ;;  %v231_v46 = vsel %vm3750_vm4, %v210_v36, 0.0 }
  0x81   :  { %v209_v39 = vsel %vm4778_vm2, %v193_v28, %v195_v37 }
  0x82   :  { %v232_v43 = vsel %vm3741_vm3, %v209_v39, 0.0  ;;  %v189_v44 = vpop.permute.xlu1 %188 }
  0x83   :  { %v211_v47 = vsel %vm4778_vm2, %v189_v44, %v191_v32  ;;  %3023 = vmatprep.subr.msk.mxu1 %vm4780_vm0, %v232_v43  ;;  %v3041_v43 = vld [vmem:[%s4770_s1 + $0x40] sm:$0xff] }
  0x84   :  { %v230_v49 = vsel %vm3763_vm5, %v211_v47, 0.0  ;;  %v203_v50 = vpop.permute.xlu0 %202  ;;  %3024 = vmatpush1.msk.msra.mxu1 %vm4780_vm0, %v231_v46  ;;  %v3042_v46 = vld [vmem:[%s4770_s1 + $0x48] sm:$0xff]  ;;  %v3043_v47 = vld [vmem:[%s4770_s1 + $0x50] sm:$0xff] }
  0x85   :  { %v212_v51 = vsel %vm4778_vm2, %v203_v50, %v189_v44  ;;  %3017 = vmatprep.subr.msk.mxu0 %vm4780_vm0, %v230_v49  ;;  %3025 = vmatmul.mubr.msk.f32.vlgmr.msra.gmra.mrb[0].mxu1 %vm295_vm1, %v3776_v45  ;;  %v4817_v44 = vmov 0 }
  0x86   :  { %v229_v55 = vsel %vm4777_vm6, %v212_v51, 0.0  ;;  %v201_v56 = vpop.permute.xlu1 %200  ;;  %876 = vmatprep.mubr.f32.mxu1 %v3581_v4  ;;  %vm3908_vm6 = vcmp.ne.s32.totalorder %v113_v41, 127  ;;  %v4815_v41 = vmov 0 }
  0x87   :  { %v205_v58 = vsel %vm4778_vm2, %v201_v56, %v203_v50  ;;  %3018 = vmatpush1.msk.msra.mxu0 %vm4780_vm0, %v229_v55  ;;  %v4812_v25 = vsel %vm3908_vm6, 4294967295, %v4811_v25 }
  0x88   :  { %v236_v60 = vsel %vm3795_vm7, %v205_v58, 0.0  ;;  %3019 = vmatmul.mubr.msk.f32.vlgmr.msra.gmra.mrb[0].mxu0 %vm295_vm1, %v3776_v45  ;;  %v199_v61 = vpop.permute.xlu0 %198 }
  0x89   :  { %3026 = vmatmul.mubr.msk.f32.gmra.mrb[2].mxu1 %vm295_vm1, %v3807_v57  ;;  %3035 = vmatprep.subr.msk.mxu1 %vm4780_vm0, %v236_v60  ;;  %v206_v62 = vsel %vm4778_vm2, %v199_v61, %v201_v56 }
  0x8a   :  { %v235_v1 = vsel %vm3814_vm8, %v206_v62, 0.0  ;;  %v197_v2 = vpop.permute.xlu1 %196  ;;  %787 = vmatprep.mubr.f32.mxu0 %v3581_v4  ;;  %882 = vmatprep.mubr.f32.mxu1 %v3581_v4 }
  0x8b   :  { %v207_v5 = vsel %vm4778_vm2, %v197_v2, %v199_v61  ;;  %v208_v6 = vsel %vm4778_vm2, %v195_v37, %v197_v2  ;;  %3036 = vmatpush1.msk.msra.mxu1 %vm4780_vm0, %v235_v1  ;;  %vm3930_vm2 = vcmp.ne.s32.totalorder %v99_v54, 127 }
  0x8c   :  { %v233_v7 = vsel %vm3829_vm9, %v208_v6, 0.0  ;;  %v234_v8 = vsel %vm3835_vm10, %v207_v5, 0.0  ;;  %3020 = vmatmul.mubr.msk.f32.gmra.mrb[2].mxu0 %vm295_vm1, %v3807_v57  ;;  %v244_v9 = vpop.permute.xlu0 %243 }
  0x8d   :  { %3027 = vmatmul.mubr.msk.f32.gmra.mrb[4].mxu1 %vm295_vm1, %v288_v3  ;;  %3029 = vmatprep.subr.msk.mxu0 %vm4780_vm0, %v234_v8 }
  0x8e   :  { %3030 = vmatpush1.msk.msra.mxu0 %vm4780_vm0, %v233_v7  ;;  %793 = vmatprep.mubr.f32.mxu0 %v3581_v4  ;;  %v246_v12 = vpop.permute.xlu1 %245 }
  0x8f   :  { %888 = vmatprep.mubr.f32.mxu1 %v3581_v4  ;;  %v257_v13 = vsel %vm4785_vm11, %v244_v9, %v246_v12 }
  0x90   :  { %3021 = vmatmul.mubr.msk.f32.gmra.mrb[4].mxu0 %vm295_vm1, %v288_v3  ;;  %v281_v14 = vsel %vm3862_vm12, %v257_v13, 0.0  ;;  %v242_v16 = vpop.permute.xlu0 %241 }
  0x91   :  { %3028 = vmatmul.mubr.msk.f32.gmra.mrb[6].mxu1 %vm295_vm1, %v289_v11  ;;  %799 = vmatprep.mubr.f32.mxu0 %v3581_v4  ;;  %v258_v18 = vsel %vm4785_vm11, %v242_v16, %v244_v9 }
  0x92   :  { %1048 = vmatprep.mubr.f32.mxu1 %v3581_v4  ;;  %v240_v19 = vpop.permute.xlu1 %239  ;;  %3051 = vmatprep.subr.msk.mxu1 %vm4780_vm0, %v281_v14  ;;  %v280_v21 = vsel %vm3879_vm13, %v258_v18, 0.0 }
  0x93   :  { %v259_v20 = vsel %vm4785_vm11, %v240_v19, %v242_v16 }
  0x94   :  { %3022 = vmatmul.mubr.msk.f32.gmra.mrb[6].mxu0 %vm295_vm1, %v289_v11  ;;  %v279_v22 = vsel %vm3887_vm14, %v259_v20, 0.0  ;;  %v238_v24 = vpop.permute.xlu0 %237 }
  0x95   :  { %3037 = vmatmul.mubr.msk.f32.vlgmr.msra.gmra.mrb[8].mxu1 %vm295_vm1, %v3776_v45  ;;  %959 = vmatprep.mubr.f32.mxu0 %v3581_v4  ;;  %v260_v26 = vsel %vm4785_vm11, %v238_v24, %v240_v19 }
  0x96   :  { %1054 = vmatprep.mubr.f32.mxu1 %v3581_v4  ;;  %v252_v27 = vpop.permute.xlu1 %251  ;;  %3052 = vmatpush1.msk.msra.mxu1 %vm4780_vm0, %v280_v21  ;;  %v278_v29 = vsel %vm4779_vm15, %v260_v26, 0.0  ;;  %vm3950_vm15 = vcmp.ne.s32.totalorder %v106_v48, 127  ;;  %v3044_v48 = vld [vmem:[%s4770_s1 + $0x58] sm:$0xff] }
  0x97   :  { %v261_v28 = vsel %vm4785_vm11, %v252_v27, %v238_v24  ;;  %3045 = vmatprep.subr.msk.mxu0 %vm4780_vm0, %v279_v22  ;;  %v4816_v41 = vsel %vm3950_vm15, 4294967295, %v4815_v41 }
  0x98   :  { %3031 = vmatmul.mubr.msk.f32.vlgmr.msra.gmra.mrb[8].mxu0 %vm295_vm1, %v3776_v45  ;;  %v285_v30 = vsel %vm3908_vm6, %v261_v28, 0.0  ;;  %v250_v31 = vpop.permute.xlu0 %249 }
  0x99   :  { %3038 = vmatmul.mubr.msk.f32.gmra.mrb[10].mxu1 %vm295_vm1, %v3807_v57  ;;  %965 = vmatprep.mubr.f32.mxu0 %v3581_v4  ;;  %v254_v42 = vsel %vm4785_vm11, %v250_v31, %v252_v27 }
  0x9a   :  { %1060 = vmatprep.mubr.f32.mxu1 %v3581_v4  ;;  %v248_v36 = vpop.permute.xlu1 %247  ;;  %3046 = vmatpush1.msk.msra.mxu0 %vm4780_vm0, %v278_v29  ;;  %v284_v34 = vsel %vm3950_vm15, %v254_v42, 0.0  ;;  %vm4819_vm15 = vcmask 1043456  }
  0x9b   :  { %v255_v37 = vsel %vm4785_vm11, %v248_v36, %v250_v31  ;;  %3063 = vmatprep.subr.msk.mxu1 %vm4780_vm0, %v285_v30  ;;  %v256_v45 = vsel %vm4785_vm11, %v246_v12, %v248_v36  ;;  %vm4820_vm6 = vmmov %vm4819_vm15 }
  0x9c   :  { %3032 = vmatmul.mubr.msk.f32.gmra.mrb[10].mxu0 %vm295_vm1, %v3807_v57  ;;  %v283_v39 = vsel %vm3930_vm2, %v255_v37, 0.0  ;;  %vm4789_vm11 = vmpackc.low %vm3763_vm5, %vm3763_vm5 }
  0x9d   :  { %3039 = vmatmul.mubr.msk.f32.gmra.mrb[12].mxu1 %vm295_vm1, %v288_v3  ;;  %971 = vmatprep.mubr.f32.mxu0 %v3581_v4 }
  0x9e   :  { %1066 = vmatprep.mubr.f32.mxu1 %v3581_v4  ;;  %3057 = vmatprep.subr.msk.mxu0 %vm4780_vm0, %v283_v39  ;;  %vm3967_vm0 = vcmp.ne.s32.totalorder %v92_v53, 127 }
  0x9f   :  { %v4818_v44 = vsel %vm3967_vm0, 4294967295, %v4817_v44  ;;  %v282_v38 = vsel %vm3967_vm0, %v256_v45, 0.0 }
  0xa0   :  { %3033 = vmatmul.mubr.msk.f32.gmra.mrb[12].mxu0 %vm295_vm1, %v288_v3 }
  0xa1   :  { %3040 = vmatmul.mubr.msk.f32.gmra.mrb[14].mxu1 %vm295_vm1, %v289_v11  ;;  %977 = vmatprep.mubr.f32.mxu0 %v3581_v4 }
  0xa2   :  { %1267 = vmatprep.mubr.f32.mxu1 %v3581_v4 }
  0xa4   :  { %3034 = vmatmul.mubr.msk.f32.gmra.mrb[14].mxu0 %vm295_vm1, %v289_v11 }
  0xa5   :  { %3053 = vmatmul.mubr.msk.f32.vlgmr.msra.gmra.mrb[0].mxu1 %vm295_vm1, %v3041_v43  ;;  %1178 = vmatprep.mubr.f32.mxu0 %v3581_v4 }
  0xa6   :  { %1273 = vmatprep.mubr.f32.mxu1 %v3581_v4  ;;  %3064 = vmatpush1.msk.msra.mxu1 %vm4819_vm15, %v284_v34 }
  0xa8   :  { %3047 = vmatmul.mubr.msk.f32.vlgmr.msra.gmra.mrb[0].mxu0 %vm295_vm1, %v3041_v43 }
  0xa9   :  { %3058 = vmatpush1.msk.msra.mxu0 %vm4820_vm6, %v282_v38  ;;  %3054 = vmatmul.mubr.msk.f32.gmra.mrb[2].mxu1 %vm295_vm1, %v3042_v46  ;;  %v4019_v49 = vpop.permute.xlu0 %1508  ;;  %vm4821_vm6 = vcmp.lt.s32.totalorder %v3721_v23, 1 }
  0xaa   :  { %1184 = vmatprep.mubr.f32.mxu0 %v3581_v4  ;;  %1279 = vmatprep.mubr.f32.mxu1 %v3581_v4  ;;  %vm4822_vm15 = vmmov %vm4821_vm6 }
  0xab   :  { %v4021_v53 = vpop.permute.xlu1 %1513 }
  0xac   :  { %3048 = vmatmul.mubr.msk.f32.gmra.mrb[2].mxu0 %vm295_vm1, %v3042_v46 }
  0xad   :  { %3055 = vmatmul.mubr.msk.f32.gmra.mrb[4].mxu1 %vm295_vm1, %v3043_v47  ;;  %1190 = vmatprep.mubr.f32.mxu0 %v3581_v4  ;;  %v4034_v28 = vpop.permute.xlu0 %1523 }
  0xae   :  { %1285 = vmatprep.mubr.f32.mxu1 %v3581_v4 }
  0xaf   :  { %v4029_v6 = vpop.permute.xlu1 %1518 }
  0xb0   :  { %3049 = vmatmul.mubr.msk.f32.gmra.mrb[4].mxu0 %vm295_vm1, %v3043_v47 }
  0xb1   :  { %3056 = vmatmul.mubr.msk.f32.gmra.mrb[6].mxu1 %vm295_vm1, %v3044_v48  ;;  %1196 = vmatprep.mubr.f32.mxu0 %v3581_v4 }
  0xb2   :  { %1445 = vmatprep.mubr.f32.mxu1 %v3581_v4 }
  0xb4   :  { %3050 = vmatmul.mubr.msk.f32.gmra.mrb[6].mxu0 %vm295_vm1, %v3044_v48 }
  0xb5   :  { %3065 = vmatmul.mubr.msk.f32.vlgmr.msra.gmra.mrb[8].mxu1 %vm295_vm1, %v3041_v43  ;;  %1356 = vmatprep.mubr.f32.mxu0 %v3581_v4 }
  0xb6   :  { %1451 = vmatprep.mubr.f32.mxu1 %v3581_v4 }
  0xb8   :  { %3059 = vmatmul.mubr.msk.f32.vlgmr.msra.gmra.mrb[8].mxu0 %vm295_vm1, %v3041_v43 }
  0xb9   :  { %3066 = vmatmul.mubr.msk.f32.gmra.mrb[10].mxu1 %vm295_vm1, %v3042_v46  ;;  %1362 = vmatprep.mubr.f32.mxu0 %v3581_v4 }
  0xba   :  { %1457 = vmatprep.mubr.f32.mxu1 %v3581_v4 }
  0xbc   :  { %3060 = vmatmul.mubr.msk.f32.gmra.mrb[10].mxu0 %vm295_vm1, %v3042_v46 }
  0xbd   :  { %3067 = vmatmul.mubr.msk.f32.gmra.mrb[12].mxu1 %vm295_vm1, %v3043_v47  ;;  %1368 = vmatprep.mubr.f32.mxu0 %v3581_v4 }
  0xbe   :  { %1463 = vmatprep.mubr.f32.mxu1 %v3581_v4 }
  0xc0   :  { %3061 = vmatmul.mubr.msk.f32.gmra.mrb[12].mxu0 %vm295_vm1, %v3043_v47 }
  0xc1   :  { %3068 = vmatmul.mubr.msk.f32.gmra.mrb[14].mxu1 %vm295_vm1, %v3044_v48  ;;  %1374 = vmatprep.mubr.f32.mxu0 %v3581_v4 }
  0xc2   :  { %1999 = vmatprep.mubr.f32.mxu1 %v3581_v4 }
  0xc4   :  { %3062 = vmatmul.mubr.msk.f32.gmra.mrb[14].mxu0 %vm295_vm1, %v3044_v48  ;;  %vm4786_vm1 = vcmask 261120  }
  0xc5   :  { %1922 = vmatprep.mubr.f32.mxu0 %v3581_v4 }
 0x178   :  { %v1269_v50 = vpop.f32.mrb[0].mxu1 }
 0x179   :  { %v1271_v51 = vpop.f32.mrb[1].mxu1  ;;  %v1528_v54 = vadd.f32 %v4019_v49, %v1269_v50 }
 0x17a   :  { %v1529_v56 = vadd.f32 %v4019_v49, %v1271_v51 }
 0x17b   :  { %v1180_v55 = vpop.f32.mrb[0].mxu0  ;;  %v1560_v3 = vmax.f32 %v1528_v54, 0.0 }
 0x17c   :  { %v1275_v57 = vpop.f32.mrb[2].mxu1  ;;  %v1182_v58 = vpop.f32.mrb[1].mxu0  ;;  %v1526_v60 = vadd.f32 %v4019_v49, %v1180_v55  ;;  %v1561_v8 = vmax.f32 %v1529_v56, 0.0 }
 0x17d   :  { %v1277_v61 = vpop.f32.mrb[3].mxu1  ;;  %v1536_v62 = vadd.f32 %v4021_v53, %v1275_v57  ;;  %v1527_v1 = vadd.f32 %v4019_v49, %v1182_v58 }
 0x17e   :  { %v1537_v2 = vadd.f32 %v4021_v53, %v1277_v61  ;;  %v1558_v14 = vmax.f32 %v1526_v60, 0.0 }
 0x17f   :  { %v1186_v5 = vpop.f32.mrb[2].mxu0  ;;  %v1568_v7 = vmax.f32 %v1536_v62, 0.0  ;;  %v1559_v21 = vmax.f32 %v1527_v1, 0.0 }
 0x180   :  { %v1569_v9 = vmax.f32 %v1537_v2, 0.0  ;;  %v1534_v11 = vadd.f32 %v4021_v53, %v1186_v5  ;;  %v1281_v12 = vpop.f32.mrb[4].mxu1  ;;  %v1188_v13 = vpop.f32.mrb[3].mxu0 }
 0x181   :  { %v1535_v16 = vadd.f32 %v4021_v53, %v1188_v13  ;;  %v1283_v18 = vpop.f32.mrb[5].mxu1  ;;  %v3403_v19 = vpack.i.bf16 %v1568_v7, %v1560_v3  ;;  %v3171_v20 = vpack.c.bf16 %v1568_v7, %v1560_v3  ;;  %v1544_v29 = vadd.f32 %v4029_v6, %v1281_v12 }
 0x182   :  { %v1566_v22 = vmax.f32 %v1534_v11, 0.0  ;;  %v3169_v24 = vpack.c.bf16 %v1569_v9, %v1561_v8  ;;  %v4037_v30 = vpack.i.bf16 %v1569_v9, %v1561_v8  ;;  %v1545_v36 = vadd.f32 %v4029_v6, %v1283_v18 }
 0x183   :  { %v1567_v26 = vmax.f32 %v1535_v16, 0.0  ;;  %3404 = vrot.lane.b32.xlu0 %v3403_v19, %s3583_s17  ;;  %v1192_v27 = vpop.f32.mrb[4].mxu0  ;;  %v1576_v50 = vmax.f32 %v1544_v29, 0.0  ;;  %v4068_v29 = vld [vmem:[%s4772_s3 + $0x10] sm:$0xff] }
 0x184   :  { %v3163_v31 = vpack.c.bf16 %v1566_v22, %v1558_v14  ;;  %v1194_v37 = vpop.f32.mrb[5].mxu0  ;;  %v1287_v39 = vpop.f32.mrb[6].mxu1  ;;  %3170 = vmatprep.subr.bf16.mxu1 %v3169_v24  ;;  %v4040_v42 = vpack.i.bf16 %v1566_v22, %v1558_v14  ;;  %v1542_v43 = vadd.f32 %v4029_v6, %v1192_v27  ;;  %v1577_v55 = vmax.f32 %v1545_v36, 0.0 }
 0x185   :  { %v1552_v34 = vadd.f32 %v4034_v28, %v1287_v39  ;;  %v1289_v45 = vpop.f32.mrb[7].mxu1  ;;  %3172 = vmatpush1.bf16.msra.mxu1 %v3171_v20  ;;  %v3408_v46 = vpack.i.bf16 %v1567_v26, %v1559_v21  ;;  %v3161_v38 = vpack.c.bf16 %v1567_v26, %v1559_v21  ;;  %v1543_v47 = vadd.f32 %v4029_v6, %v1194_v37 }
 0x186   :  { %v1553_v48 = vadd.f32 %v4034_v28, %v1289_v45  ;;  %3394 = vrot.lane.b32.xlu1 %v4040_v42, %s3582_s9  ;;  %v1574_v61 = vmax.f32 %v1542_v43, 0.0 }
 0x187   :  { %v1584_v51 = vmax.f32 %v1552_v34, 0.0  ;;  %3409 = vrot.lane.b32.xlu0 %v3408_v46, %s3582_s9  ;;  %v1198_v54 = vpop.f32.mrb[6].mxu0  ;;  %3162 = vmatprep.subr.bf16.mxu0 %v3161_v38  ;;  %v1575_v5 = vmax.f32 %v1543_v47, 0.0 }
 0x188   :  { %v1585_v56 = vmax.f32 %v1553_v48, 0.0  ;;  %v1550_v57 = vadd.f32 %v4034_v28, %v1198_v54  ;;  %v1200_v58 = vpop.f32.mrb[7].mxu0  ;;  %v1447_v60 = vpop.f32.mrb[8].mxu1  ;;  %3164 = vmatpush1.bf16.msra.mxu0 %v3163_v31 }
 0x189   :  { %v3175_v62 = vpack.c.bf16 %v1584_v51, %v1576_v50  ;;  %v1551_v1 = vadd.f32 %v4034_v28, %v1200_v58  ;;  %v1449_v2 = vpop.f32.mrb[9].mxu1  ;;  %v4051_v3 = vpack.i.bf16 %v1584_v51, %v1576_v50  ;;  %v1532_v12 = vadd.f32 %v4019_v49, %v1447_v60 }
 0x18a   :  { %v1582_v7 = vmax.f32 %v1550_v57, 0.0  ;;  %3399 = vrot.lane.b32.xlu1 %v3403_v19, %s3582_s9  ;;  %v3173_v8 = vpack.c.bf16 %v1585_v56, %v1577_v55  ;;  %v4054_v9 = vpack.i.bf16 %v1585_v56, %v1577_v55  ;;  %v1533_v16 = vadd.f32 %v4019_v49, %v1449_v2  ;;  %v4086_v56 = vld [vmem:[%s4772_s3 + $0x18] sm:$0xff] }
 0x18b   :  { %v1583_v11 = vmax.f32 %v1551_v1, 0.0  ;;  %3414 = vrot.lane.b32.xlu0 %v4037_v30, %s3582_s9  ;;  %v1358_v13 = vpop.f32.mrb[8].mxu0  ;;  %v1564_v37 = vmax.f32 %v1532_v12, 0.0 }
 0x18c   :  { %v3167_v14 = vpack.c.bf16 %v1582_v7, %v1574_v61  ;;  %v1530_v18 = vadd.f32 %v4019_v49, %v1358_v13  ;;  %v1360_v20 = vpop.f32.mrb[9].mxu0  ;;  %v1453_v21 = vpop.f32.mrb[10].mxu1  ;;  %3174 = vmatprep.subr.bf16.mxu1 %v3173_v8  ;;  %v4061_v22 = vpack.i.bf16 %v1582_v7, %v1574_v61  ;;  %v1565_v43 = vmax.f32 %v1533_v16, 0.0 }
 0x18d   :  { %v1531_v19 = vadd.f32 %v4019_v49, %v1360_v20  ;;  %v1540_v24 = vadd.f32 %v4021_v53, %v1453_v21  ;;  %v1455_v26 = vpop.f32.mrb[11].mxu1  ;;  %3176 = vmatpush1.bf16.msra.mxu1 %v3175_v62  ;;  %v3165_v27 = vpack.c.bf16 %v1583_v11, %v1575_v5  ;;  %v4070_v31 = vpack.i.bf16 %v1583_v11, %v1575_v5 }
 0x18e   :  { %v1541_v36 = vadd.f32 %v4021_v53, %v1455_v26  ;;  %3419 = vrot.lane.b32.xlu1 %v3408_v46, %s3583_s17  ;;  %v1562_v34 = vmax.f32 %v1530_v18, 0.0 }
 0x18f   :  { %v1572_v39 = vmax.f32 %v1540_v24, 0.0  ;;  %3429 = vrot.lane.b32.xlu0 %v4061_v22, %s3582_s9  ;;  %v1364_v49 = vpop.f32.mrb[10].mxu0  ;;  %3166 = vmatprep.subr.bf16.mxu0 %v3165_v27  ;;  %v1563_v50 = vmax.f32 %v1531_v19, 0.0 }
 0x190   :  { %v1573_v45 = vmax.f32 %v1541_v36, 0.0  ;;  %v1538_v38 = vadd.f32 %v4021_v53, %v1364_v49  ;;  %v1366_v47 = vpop.f32.mrb[11].mxu0  ;;  %v1459_v48 = vpop.f32.mrb[12].mxu1  ;;  %3168 = vmatpush1.bf16.msra.mxu0 %v3167_v14  ;;  %3073 = vmatmul.mubr.msk.f32.vlgmr.msra.gmra.mrb[16].mxu1 %vm4786_vm1, %v4068_v29 }
 0x191   :  { %v3187_v46 = vpack.c.bf16 %v1572_v39, %v1564_v37  ;;  %v1539_v51 = vadd.f32 %v4021_v53, %v1366_v47  ;;  %v1461_v54 = vpop.f32.mrb[13].mxu1  ;;  %v4080_v55 = vpack.i.bf16 %v1572_v39, %v1564_v37  ;;  %2005 = vmatprep.mubr.f32.mxu1 %v3581_v4  ;;  %v1548_v58 = vadd.f32 %v4029_v6, %v1459_v48 }
 0x192   :  { %v1570_v57 = vmax.f32 %v1538_v38, 0.0  ;;  %3424 = vrot.lane.b32.xlu1 %v4037_v30, %s3583_s17  ;;  %v3185_v60 = vpack.c.bf16 %v1573_v45, %v1565_v43  ;;  %v4091_v61 = vpack.i.bf16 %v1573_v45, %v1565_v43  ;;  %v1549_v62 = vadd.f32 %v4029_v6, %v1461_v54 }
 0x193   :  { %v1571_v53 = vmax.f32 %v1539_v51, 0.0  ;;  %3434 = vrot.lane.b32.xlu0 %v4051_v3, %s3582_s9  ;;  %v1370_v1 = vpop.f32.mrb[12].mxu0  ;;  %3071 = vmatmul.mubr.msk.f32.vlgmr.msra.gmra.mrb[16].mxu0 %vm4786_vm1, %v4068_v29  ;;  %v1580_v18 = vmax.f32 %v1548_v58, 0.0 }
 0x194   :  { %v3179_v2 = vpack.c.bf16 %v1570_v57, %v1562_v34  ;;  %v1546_v5 = vadd.f32 %v4029_v6, %v1370_v1  ;;  %v1372_v7 = vpop.f32.mrb[13].mxu0  ;;  %v1465_v8 = vpop.f32.mrb[14].mxu1  ;;  %3186 = vmatprep.subr.bf16.mxu1 %v3185_v60  ;;  %v3458_v30 = vpack.i.bf16 %v1570_v57, %v1562_v34  ;;  %3074 = vmatmul.mubr.msk.f32.gmra.mrb[18].mxu1 %vm4786_vm1, %v4086_v56  ;;  %v1581_v24 = vmax.f32 %v1549_v62, 0.0 }
 0x195   :  { %v1556_v11 = vadd.f32 %v4034_v28, %v1465_v8  ;;  %v1467_v12 = vpop.f32.mrb[15].mxu1  ;;  %3188 = vmatpush1.bf16.msra.mxu1 %v3187_v46  ;;  %v3177_v13 = vpack.c.bf16 %v1571_v53, %v1563_v50  ;;  %v3473_v14 = vpack.i.bf16 %v1571_v53, %v1563_v50  ;;  %2153 = vmatprep.mubr.f32.mxu1 %v3581_v4 }
 0x196   :  { %v1557_v16 = vadd.f32 %v4034_v28, %v1467_v12  ;;  %3439 = vrot.lane.b32.xlu1 %v4070_v31, %s3582_s9  ;;  %v1547_v20 = vadd.f32 %v4029_v6, %v1372_v7  ;;  %v1578_v26 = vmax.f32 %v1546_v5, 0.0  ;;  %1928 = vmatprep.mubr.f32.mxu0 %v3581_v4 }
 0x197   :  { %v1588_v21 = vmax.f32 %v1556_v11, 0.0  ;;  %3459 = vrot.lane.b32.xlu0 %v3458_v30, %s3583_s17  ;;  %v1376_v19 = vpop.f32.mrb[14].mxu0  ;;  %3178 = vmatprep.subr.bf16.mxu0 %v3177_v13 }
 0x198   :  { %v1589_v27 = vmax.f32 %v1557_v16, 0.0  ;;  %v1554_v36 = vadd.f32 %v4034_v28, %v1376_v19  ;;  %v1378_v37 = vpop.f32.mrb[15].mxu0  ;;  %3180 = vmatpush1.bf16.msra.mxu0 %v3179_v2  ;;  %v1579_v38 = vmax.f32 %v1547_v20, 0.0 }
 0x199   :  { %v3191_v39 = vpack.c.bf16 %v1588_v21, %v1580_v18  ;;  %v1555_v49 = vadd.f32 %v4034_v28, %v1378_v37  ;;  %v3483_v43 = vpack.i.bf16 %v1588_v21, %v1580_v18  ;;  %3072 = vmatmul.mubr.msk.f32.gmra.mrb[18].mxu0 %vm4786_vm1, %v4086_v56 }
 0x19a   :  { %v1586_v6 = vmax.f32 %v1554_v36, 0.0  ;;  %3444 = vrot.lane.b32.xlu1 %v4054_v9, %s3582_s9  ;;  %v3189_v34 = vpack.c.bf16 %v1589_v27, %v1581_v24  ;;  %v3488_v45 = vpack.i.bf16 %v1589_v27, %v1581_v24  ;;  %2076 = vmatprep.mubr.f32.mxu0 %v3581_v4 }
 0x19b   :  { %v1587_v47 = vmax.f32 %v1555_v49, 0.0  ;;  %3474 = vrot.lane.b32.xlu0 %v3473_v14, %s3582_s9 }
 0x19c   :  { %v3183_v48 = vpack.c.bf16 %v1586_v6, %v1578_v26  ;;  %3190 = vmatprep.subr.bf16.mxu1 %v3189_v34  ;;  %v3478_v50 = vpack.i.bf16 %v1586_v6, %v1578_v26 }
 0x19d   :  { %3192 = vmatpush1.bf16.msra.mxu1 %v3191_v39  ;;  %v3181_v28 = vpack.c.bf16 %v1587_v47, %v1579_v38  ;;  %v3508_v46 = vpack.i.bf16 %v1587_v47, %v1579_v38 }
 0x19e   :  { %3449 = vrot.lane.b32.xlu1 %v3458_v30, %s3582_s9 }
 0x19f   :  { %3479 = vrot.lane.b32.xlu0 %v3478_v50, %s3582_s9  ;;  %3182 = vmatprep.subr.bf16.mxu0 %v3181_v28 }
 0x1a0   :  { %3184 = vmatpush1.bf16.msra.mxu0 %v3183_v48  ;;  %3077 = vmatmul.mubr.msk.f32.vlgmr.msra.gmra.mrb[20].mxu1 %vm4786_vm1, %v4068_v29 }
 0x1a1   :  { %2159 = vmatprep.mubr.f32.mxu1 %v3581_v4 }
 0x1a2   :  { %3454 = vrot.lane.b32.xlu1 %v4080_v55, %s3582_s9 }
 0x1a3   :  { %3484 = vrot.lane.b32.xlu0 %v3483_v43, %s3582_s9  ;;  %3075 = vmatmul.mubr.msk.f32.vlgmr.msra.gmra.mrb[20].mxu0 %vm4786_vm1, %v4068_v29 }
 0x1a4   :  { %3078 = vmatmul.mubr.msk.f32.gmra.mrb[22].mxu1 %vm4786_vm1, %v4086_v56  ;;  %2082 = vmatprep.mubr.f32.mxu0 %v3581_v4 }
 0x1a5   :  { %2313 = vmatprep.mubr.f32.mxu1 %v3581_v4 }
 0x1a6   :  { %3464 = vrot.lane.b32.xlu1 %v4091_v61, %s3582_s9 }
 0x1a7   :  { %3489 = vrot.lane.b32.xlu0 %v3488_v45, %s3582_s9  ;;  %3076 = vmatmul.mubr.msk.f32.gmra.mrb[22].mxu0 %vm4786_vm1, %v4086_v56  ;;  %vm4823_vm1 = vmmov %vm4821_vm6 }
 0x1a8   :  { %2236 = vmatprep.mubr.f32.mxu0 %v3581_v4  ;;  %vm4825_vm0 = vmmov %vm4823_vm1 }
 0x1aa   :  { %3469 = vrot.lane.b32.xlu1 %v4040_v42, %s3583_s17  ;;  %v2814_v42 = vld [vmem:[%s4773_s4 + $0x8] sm:$0xff] }
 0x1ab   :  { %3494 = vrot.lane.b32.xlu0 %v4070_v31, %s3583_s17 }
 0x1ae   :  { %3499 = vrot.lane.b32.xlu1 %v4051_v3, %s3583_s17  ;;  %v2813_v3 = vld [vmem:[%s4773_s4] sm:$0xff] }
 0x1af   :  { %3504 = vrot.lane.b32.xlu0 %v4054_v9, %s3583_s17  ;;  %v2858_v9 = vld [vmem:[%s4774_s5 + $0x8] sm:$0xff] }
 0x1b2   :  { %3509 = vrot.lane.b32.xlu1 %v3508_v46, %s3582_s9 }
 0x1b3   :  { %3519 = vrot.lane.b32.xlu0 %v4061_v22, %s3583_s17  ;;  %v2857_v22 = vld [vmem:[%s4774_s5] sm:$0xff] }
 0x1b6   :  { %3514 = vrot.lane.b32.xlu1 %v3478_v50, %s3583_s17 }
 0x1b7   :  { %3529 = vrot.lane.b32.xlu0 %v4080_v55, %s3583_s17 }
 0x1ba   :  { %3524 = vrot.lane.b32.xlu1 %v3473_v14, %s3583_s17 }
 0x1bb   :  { %3544 = vrot.lane.b32.xlu0 %v3508_v46, %s3583_s17 }
 0x1be   :  { %3534 = vrot.lane.b32.xlu1 %v4091_v61, %s3583_s17 }
 0x1bf   :  { %3549 = vrot.lane.b32.xlu0 %v3488_v45, %s3583_s17 }
 0x1c2   :  { %3539 = vrot.lane.b32.xlu1 %v3483_v43, %s3583_s17 }
 0x1c3   :  { %2822 = vperm.xlu0 %3391, %v2814_v42  }
 0x1c6   :  { %2817 = vperm.xlu1 %3392, %v2813_v3  }
 0x1c7   :  { %2866 = vperm.xlu0 %3391, %v2858_v9   ;;  %v4268_v9 = vld [vmem:[%s4772_s3] sm:$0xff] }
 0x1ca   :  { %2861 = vperm.xlu1 %3392, %v2857_v22  }
 0x1f5   :  { %v4169_v29 = vpop.permute.xlu0 %3404 }
 0x1f8   :  { %v4171_v31 = vpop.permute.xlu1 %3394 }
 0x1f9   :  { %v3397_v51 = vunpack.i.h.bf16 %v4171_v31  ;;  %v3396_v54 = vunpack.i.l.bf16 %v4171_v31  ;;  %v3410_v55 = vpop.permute.xlu0 %3409 }
 0x1fa   :  { %v3412_v56 = vunpack.i.h.bf16 %v3410_v55  ;;  %v3411_v57 = vunpack.i.l.bf16 %v3410_v55 }
 0x1fc   :  { %v1679_v58 = vsel %vm4821_vm6, %v3397_v51, %v3412_v56  ;;  %v1678_v60 = vsel %vm4822_vm15, %v3396_v54, %v3411_v57  ;;  %v3400_v61 = vpop.permute.xlu1 %3399  ;;  %vm4824_vm15 = vmmov %vm4823_vm1 }
 0x1fd   :  { %v3193_v53 = vpack.c.bf16 %v1679_v58, %v1678_v60  ;;  %v3402_v62 = vunpack.i.h.bf16 %v3400_v61  ;;  %v3401_v1 = vunpack.i.l.bf16 %v3400_v61  ;;  %v4186_v2 = vpop.permute.xlu0 %3414 }
 0x1fe   :  { %v3417_v5 = vunpack.i.h.bf16 %v4186_v2  ;;  %v3416_v7 = vunpack.i.l.bf16 %v4186_v2 }
 0x1ff   :  { %v1674_v8 = vsel %vm4821_vm6, %v3411_v57, %v3401_v1  ;;  %v1675_v30 = vsel %vm4823_vm1, %v3412_v56, %v3402_v62  ;;  %3195 = vmatprep.subr.msk.bf16.mxu0 %vm4789_vm11, %v3193_v53  ;;  %vm3206_vm1 = vmpackc.low %vm3741_vm3, %vm3741_vm3  ;;  %v3407_v56 = vunpack.i.h.bf16 %v4169_v29  ;;  %v3406_v57 = vunpack.i.l.bf16 %v4169_v29 }
 0x200   :  { %v1671_v11 = vsel %vm4824_vm15, %v3402_v62, %v3417_v5  ;;  %v1670_v12 = vsel %vm4825_vm0, %v3401_v1, %v3416_v7  ;;  %v4207_v13 = vpop.permute.xlu1 %3419  ;;  %vm4790_vm6 = vmpackc.low %vm3750_vm4, %vm3750_vm4  ;;  %v3208_v18 = vpack.c.bf16 %v1675_v30, %v1674_v8  ;;  %vm4831_vm3 = vcmask 261120  }
 0x201   :  { %v3205_v14 = vpack.c.bf16 %v1671_v11, %v1670_v12  ;;  %v4215_v16 = vpop.permute.xlu0 %3429  ;;  %vm4826_vm15 = vmmov %vm4825_vm0  ;;  %v3422_v35 = vunpack.i.h.bf16 %v4207_v13  ;;  %v3421_v60 = vunpack.i.l.bf16 %v4207_v13  ;;  %v4290_v12 = vld [vmem:[%s4772_s3 + $0x8] sm:$0xff] }
 0x202   :  { %vm4827_vm11 = vmmov %vm4825_vm0  ;;  %v3432_v42 = vunpack.i.h.bf16 %v4215_v16  ;;  %v3431_v3 = vunpack.i.l.bf16 %v4215_v16 }
 0x203   :  { %3207 = vmatprep.subr.msk.bf16.mxu1 %vm3206_vm1, %v3205_v14 }
 0x204   :  { %v4222_v20 = vpop.permute.xlu1 %3424  ;;  %3210 = vmatpush1.bf16.msk.msra.mxu1 %vm4790_vm6, %v3208_v18  ;;  %vm4828_vm6 = vmmov %vm4825_vm0 }
 0x205   :  { %v3435_v21 = vpop.permute.xlu0 %3434  ;;  %v3427_v61 = vunpack.i.h.bf16 %v4222_v20 }
 0x206   :  { %v3437_v36 = vunpack.i.h.bf16 %v3435_v21  ;;  %v3436_v37 = vunpack.i.l.bf16 %v3435_v21 }
 0x208   :  { %v3440_v19 = vpop.permute.xlu1 %3439 }
 0x209   :  { %v4229_v24 = vpop.permute.xlu0 %3459  ;;  %v3442_v26 = vunpack.i.h.bf16 %v3440_v19  ;;  %v3441_v27 = vunpack.i.l.bf16 %v3440_v19 }
 0x20a   :  { %v3462_v8 = vunpack.i.h.bf16 %v4229_v24  ;;  %v3461_v30 = vunpack.i.l.bf16 %v4229_v24 }
 0x20b   :  { %v1677_v34 = vsel %vm4825_vm0, %v3442_v26, %v3437_v36  ;;  %v1676_v45 = vsel %vm4826_vm15, %v3441_v27, %v3436_v37  ;;  %v1680_v55 = vsel %vm4825_vm0, %v3431_v3, %v3441_v27  ;;  %vm4835_vm15 = vmmov %vm4825_vm0 }
 0x20c   :  { %v4231_v39 = vpop.permute.xlu1 %3444  ;;  %v3214_v28 = vpack.c.bf16 %v1677_v34, %v1676_v45 }
 0x20d   :  { %v3447_v49 = vunpack.i.h.bf16 %v4231_v39  ;;  %v3446_v43 = vunpack.i.l.bf16 %v4231_v39  ;;  %v4235_v6 = vpop.permute.xlu0 %3474 }
 0x20e   :  { %v3477_v11 = vunpack.i.h.bf16 %v4235_v6  ;;  %v3476_v14 = vunpack.i.l.bf16 %v4235_v6 }
 0x20f   :  { %v1673_v38 = vsel %vm4827_vm11, %v3437_v36, %v3447_v49  ;;  %v1672_v47 = vsel %vm4828_vm6, %v3436_v37, %v3446_v43  ;;  %vm4829_vm11 = vmpackc.low %vm3750_vm4, %vm3750_vm4  ;;  %vm4832_vm4 = vcmp.ne.s32.totalorder %v3721_v23, 0 }
 0x210   :  { %v3211_v48 = vpack.c.bf16 %v1673_v38, %v1672_v47  ;;  %v4249_v50 = vpop.permute.xlu1 %3449  ;;  %vm4830_vm6 = vmmov %vm4825_vm0 }
 0x211   :  { %v4251_v46 = vpop.permute.xlu0 %3479  ;;  %v1681_v22 = vsel %vm4830_vm6, %v3432_v42, %v3442_v26  ;;  %v3452_v16 = vunpack.i.h.bf16 %v4249_v50  ;;  %v3451_v18 = vunpack.i.l.bf16 %v4249_v50  ;;  %vm4837_vm6 = vmmov %vm4831_vm3 }
 0x212   :  { %3213 = vmatprep.subr.msk.bf16.mxu1 %vm3206_vm1, %v3211_v48  ;;  %v3199_v1 = vpack.c.bf16 %v1681_v22, %v1680_v55  ;;  %v3482_v21 = vunpack.i.h.bf16 %v4251_v46  ;;  %vm4301_vm1 = vmpackc.low %vm4832_vm4, %vm4832_vm4 }
 0x213   :  { %3216 = vmatpush1.bf16.msk.msra.mxu1 %vm4829_vm11, %v3214_v28  ;;  %vm4836_vm11 = vmmov %vm4825_vm0 }
 0x214   :  { %v3455_v33 = vpop.permute.xlu1 %3454  ;;  %vm4839_vm4 = vmmov %vm4825_vm0 }
 0x215   :  { %v4277_v58 = vpop.permute.xlu0 %3484  ;;  %v3457_v53 = vunpack.i.h.bf16 %v3455_v33  ;;  %v3456_v62 = vunpack.i.l.bf16 %v3455_v33 }
 0x216   :  { %3097 = vmatmul.mubr.msk.f32.vlgmr.msra.gmra.mrb[16].mxu1 %vm4831_vm3, %v4268_v9  ;;  %v3487_v26 = vunpack.i.h.bf16 %v4277_v58  ;;  %v3486_v27 = vunpack.i.l.bf16 %v4277_v58  ;;  %vm4838_vm3 = vmmov %vm4825_vm0 }
 0x217   :  { %2319 = vmatprep.mubr.f32.mxu1 %v3581_v4  ;;  %v1658_v6 = vsel %vm4835_vm15, %v3476_v14, %v3456_v62  ;;  %v1659_v38 = vsel %vm4836_vm11, %v3477_v11, %v3457_v53  ;;  %vm4840_vm15 = vmmov %vm4825_vm0 }
 0x218   :  { %v3465_v19 = vpop.permute.xlu1 %3464  ;;  %vm3230_vm11 = vmpackc.low %vm3795_vm7, %vm3795_vm7 }
 0x219   :  { %v3467_v36 = vunpack.i.h.bf16 %v3465_v19  ;;  %v3466_v37 = vunpack.i.l.bf16 %v3465_v19  ;;  %v3490_v34 = vpop.permute.xlu0 %3489 }
 0x21a   :  { %v3492_v47 = vunpack.i.h.bf16 %v3490_v34  ;;  %v3491_v48 = vunpack.i.l.bf16 %v3490_v34  ;;  %3098 = vmatmul.mubr.msk.f32.gmra.mrb[18].mxu1 %vm4837_vm6, %v4290_v12  ;;  %vm4844_vm6 = vmmov %vm4825_vm0 }
 0x21b   :  { %v1683_v50 = vsel %vm4825_vm0, %v3467_v36, %v3397_v51  ;;  %v1654_v28 = vsel %vm4838_vm3, %v3456_v62, %v3466_v37  ;;  %v1655_v22 = vsel %vm4839_vm4, %v3457_v53, %v3467_v36  ;;  %v1682_v55 = vsel %vm4840_vm15, %v3466_v37, %v3396_v54  ;;  %2467 = vmatprep.mubr.f32.mxu1 %v3581_v4  ;;  %vm4841_vm3 = vmmov %vm4825_vm0 }
 0x21c   :  { %v3481_v51 = vunpack.i.l.bf16 %v4251_v46  ;;  %v3196_v33 = vpack.c.bf16 %v1683_v50, %v1682_v55  ;;  %v3229_v62 = vpack.c.bf16 %v1655_v22, %v1654_v28  ;;  %v1656_v31 = vsel %vm4825_vm0, %v3486_v27, %v3491_v48  ;;  %v4335_v54 = vpop.permute.xlu1 %3469  ;;  %vm4842_vm4 = vmmov %vm4825_vm0 }
 0x21d   :  { %v3232_v53 = vpack.c.bf16 %v1659_v38, %v1658_v6  ;;  %v1685_v19 = vsel %vm4841_vm3, %v3492_v47, %v3432_v42  ;;  %v1657_v36 = vsel %vm4842_vm4, %v3487_v26, %v3492_v47  ;;  %vm4843_vm15 = vmmov %vm4825_vm0  ;;  %v4345_v34 = vpop.permute.xlu0 %3494  ;;  %v3426_v50 = vunpack.i.l.bf16 %v4222_v20 }
 0x21e   :  { %v1684_v37 = vsel %vm4843_vm15, %v3491_v48, %v3431_v3  ;;  %v1662_v28 = vsel %vm4825_vm0, %v3451_v18, %v3476_v14  ;;  %v1663_v6 = vsel %vm4844_vm6, %v3452_v16, %v3477_v11  ;;  %v3235_v38 = vpack.c.bf16 %v1657_v36, %v1656_v31  ;;  %3198 = vmatpush1.bf16.msk.msra.mxu0 %vm4301_vm1, %v3196_v33  ;;  %vm4847_vm4 = vmpackc.low %vm3763_vm5, %vm3763_vm5 }
 0x21f   :  { %3231 = vmatprep.subr.msk.bf16.mxu1 %vm3230_vm11, %v3229_v62  ;;  %vm4845_vm3 = vcmp.lt.s32.totalorder %v3721_v23, 127  ;;  %3201 = vmatprep.subr.msk.bf16.mxu0 %vm4847_vm4, %v3199_v1  ;;  %vm4848_vm15 = vmpackc.low %vm3814_vm8, %vm3814_vm8  ;;  %vm4851_vm5 = vcmp.lt.s32.totalorder %v3721_v23, 1  ;;  %v3202_v14 = vpack.c.bf16 %v1685_v19, %v1684_v37  ;;  %v3217_v22 = vpack.c.bf16 %v1663_v6, %v1662_v28 }
 0x220   :  { %v4365_v42 = vsel %vm4845_vm3, %v3422_v35, %v3407_v56  ;;  %vm4846_vm6 = vmmov %vm4845_vm3  ;;  %3234 = vmatpush1.bf16.msk.msra.mxu1 %vm4848_vm15, %v3232_v53  ;;  %v1667_v1 = vsel %vm4851_vm5, %v3417_v5, %v3452_v16  ;;  %v4403_v47 = vpop.permute.xlu1 %3499  ;;  %v3472_v55 = vunpack.i.h.bf16 %v4335_v54  ;;  %v3471_v2 = vunpack.i.l.bf16 %v4335_v54 }
 0x221   :  { %v4373_v3 = vsel %vm4846_vm6, %v3421_v60, %v3406_v57  ;;  %vm4849_vm0 = vmmov %vm4845_vm3  ;;  %3237 = vmatprep.subr.msk.bf16.mxu1 %vm3230_vm11, %v3235_v38  ;;  %v3505_v16 = vpop.permute.xlu0 %3504  ;;  %v3497_v33 = vunpack.i.h.bf16 %v4345_v34  ;;  %v3502_v53 = vunpack.i.h.bf16 %v4403_v47  ;;  %v3501_v19 = vunpack.i.l.bf16 %v4403_v47 }
 0x222   :  { %v4391_v11 = vsel %vm4849_vm0, %v3427_v61, %v3462_v8  ;;  %vm4850_vm3 = vmmov %vm4849_vm0  ;;  %3204 = vmatpush1.bf16.msk.msra.mxu0 %vm4301_vm1, %v3202_v14  ;;  %v1799_v39 = vsel %vm4849_vm0, %v3407_v56, %v3427_v61  ;;  %v3496_v56 = vunpack.i.l.bf16 %v4345_v34  ;;  %v3507_v37 = vunpack.i.h.bf16 %v3505_v16 }
 0x223   :  { %v4397_v40 = vsel %vm4850_vm3, %v3426_v50, %v3461_v30  ;;  %vm3218_vm6 = vmpackc.low %vm3835_vm10, %vm3835_vm10  ;;  %vm4856_vm3 = vcmask 261120   ;;  %v3506_v34 = vunpack.i.l.bf16 %v3505_v16 }
 0x224   :  { %vm4852_vm4 = vmmov %vm4851_vm5  ;;  %3219 = vmatprep.subr.msk.bf16.mxu0 %vm3218_vm6, %v3217_v22  ;;  %v3510_v45 = vpop.permute.xlu1 %3509 }
 0x225   :  { %v1666_v48 = vsel %vm4852_vm4, %v3416_v7, %v3451_v18  ;;  %vm4853_vm15 = vmmov %vm4852_vm4  ;;  %v3241_v7 = vpack.c.bf16 %v4365_v42, %v4373_v3  ;;  %v3512_v61 = vunpack.i.h.bf16 %v3510_v45  ;;  %v3511_v62 = vunpack.i.l.bf16 %v3510_v45  ;;  %v4455_v31 = vpop.permute.xlu0 %3519  ;;  %3087 = vmatmul.mubr.msk.f32.vlgmr.msra.gmra.mrb[16].mxu0 %vm4856_vm3, %v4268_v9 }
 0x226   :  { %v1669_v5 = vsel %vm4853_vm15, %v3447_v49, %v3482_v21  ;;  %vm4854_vm7 = vmmov %vm4852_vm4  ;;  %v3220_v20 = vpack.c.bf16 %v1667_v1, %v1666_v48  ;;  %2242 = vmatprep.mubr.f32.mxu0 %v3581_v4  ;;  %v3522_v46 = vunpack.i.h.bf16 %v4455_v31  ;;  %v3521_v58 = vunpack.i.l.bf16 %v4455_v31 }
 0x227   :  { %v1668_v52 = vsel %vm4854_vm7, %v3446_v43, %v3481_v51  ;;  %vm3221_vm11 = vmpackc.low %vm3829_vm9, %vm3829_vm9  ;;  %v3253_v43 = vpack.c.bf16 %v4391_v11, %v4397_v40 }
 0x228   :  { %vm4855_vm1 = vmmov %vm4849_vm0  ;;  %v3226_v18 = vpack.c.bf16 %v1669_v5, %v1668_v52  ;;  %3222 = vmatpush1.bf16.msk.msra.mxu0 %vm3221_vm11, %v3220_v20  ;;  %v4493_v6 = vpop.permute.xlu1 %3514 }
 0x229   :  { %v1798_v49 = vsel %vm4855_vm1, %v3406_v57, %v3426_v50  ;;  %vm4857_vm5 = vmmov %vm4849_vm0 }
 0x22a   :  { %v1807_v29 = vsel %vm4857_vm5, %v3472_v55, %v3422_v35  ;;  %vm4858_vm4 = vmmov %vm4849_vm0  ;;  %v1665_v35 = vsel %vm4854_vm7, %v3482_v21, %v3512_v61  ;;  %v3517_v21 = vunpack.i.h.bf16 %v4493_v6  ;;  %vm4862_vm5 = vcmask 261120  }
 0x22b   :  { %v1806_v57 = vsel %vm4858_vm4, %v3471_v2, %v3421_v60  ;;  %vm4859_vm15 = vmmov %vm4854_vm7  ;;  %3088 = vmatmul.mubr.msk.f32.gmra.mrb[18].mxu0 %vm4862_vm5, %v4290_v12 }
 0x22c   :  { %v1661_v13 = vsel %vm4859_vm15, %v3512_v61, %v3487_v26  ;;  %vm4860_vm0 = vmmov %vm4854_vm7  ;;  %v3516_v26 = vunpack.i.l.bf16 %v4493_v6  ;;  %v3244_v38 = vpack.c.bf16 %v1807_v29, %v1806_v57  ;;  %vm4863_vm15 = vcmp.lt.s32.totalorder %v3721_v23, 127  ;;  %v3525_v14 = vpop.permute.xlu1 %3524  ;;  %2390 = vmatprep.mubr.f32.mxu0 %v3581_v4 }
 0x22d   :  { %v1660_v60 = vsel %vm4860_vm0, %v3511_v62, %v3486_v27  ;;  %vm4861_vm1 = vmmov %vm4860_vm0  ;;  %v3530_v27 = vpop.permute.xlu0 %3529  ;;  %v1804_v42 = vsel %vm4863_vm15, %v3496_v56, %v3501_v19  ;;  %v3527_v22 = vunpack.i.h.bf16 %v3525_v14  ;;  %v3526_v5 = vunpack.i.l.bf16 %v3525_v14 }
 0x22e   :  { %v1664_v36 = vsel %vm4861_vm1, %v3481_v51, %v3511_v62  ;;  %v3238_v28 = vpack.c.bf16 %v1661_v13, %v1660_v60  ;;  %vm3254_vm3 = vmpackc.low %vm3862_vm12, %vm3862_vm12  ;;  %v3256_v51 = vpack.c.bf16 %v1799_v39, %v1798_v49  ;;  %v3531_v39 = vunpack.i.l.bf16 %v3530_v27  ;;  %v3119_v13 = vld [vmem:[%s4772_s3 + $0x20] sm:$0xff] }
 0x22f   :  { %v3223_v50 = vpack.c.bf16 %v1665_v35, %v1664_v36  ;;  %vm3242_vm4 = vmpackc.low %vm3887_vm14, %vm3887_vm14 }
 0x230   :  { %vm4864_vm7 = vmpackc.low %vm3814_vm8, %vm3814_vm8  ;;  %vm4868_vm8 = vcmp.ne.s32.totalorder %v3721_v23, 127 }
 0x231   :  { %3225 = vmatprep.subr.msk.bf16.mxu0 %vm3218_vm6, %v3223_v50  ;;  %3240 = vmatpush1.bf16.msk.msra.mxu1 %vm4864_vm7, %v3238_v28  ;;  %vm3257_vm0 = vmpackc.low %vm3879_vm13, %vm3879_vm13  ;;  %v3545_v52 = vpop.permute.xlu0 %3544  ;;  %vm4891_vm13 = vnez %v4816_v41 }
 0x232   :  { %vm4865_vm1 = vmmov %vm4863_vm15  ;;  %3228 = vmatpush1.bf16.msk.msra.mxu0 %vm3221_vm11, %v3226_v18  ;;  %3255 = vmatprep.subr.msk.bf16.mxu1 %vm3254_vm3, %v3253_v43  ;;  %v3547_v20 = vunpack.i.h.bf16 %v3545_v52  ;;  %v3546_v18 = vunpack.i.l.bf16 %v3545_v52 }
 0x233   :  { %v1805_v3 = vsel %vm4865_vm1, %v3497_v33, %v3502_v53  ;;  %vm4866_vm5 = vmmov %vm4865_vm1  ;;  %3243 = vmatprep.subr.msk.bf16.mxu0 %vm3242_vm4, %v3241_v7  ;;  %v3532_v7 = vunpack.i.h.bf16 %v3530_v27 }
 0x234   :  { %v1797_v0 = vsel %vm4866_vm5, %v3507_v37, %v3517_v21  ;;  %vm4867_vm10 = vmmov %vm4865_vm1  ;;  %v3247_v16 = vpack.c.bf16 %v1805_v3, %v1804_v42 }
 0x235   :  { %v1796_v11 = vsel %vm4867_vm10, %v3506_v34, %v3516_v26  ;;  %vm4545_vm6 = vmpackc.low %vm4868_vm8, %vm4868_vm8  ;;  %v3550_v10 = vpop.permute.xlu0 %3549 }
 0x236   :  { %vm4871_vm15 = vmmov %vm4865_vm1  ;;  %v3259_v1 = vpack.c.bf16 %v1797_v0, %v1796_v11  ;;  %v3552_v57 = vunpack.i.h.bf16 %v3550_v10 }
 0x237   :  { %v1801_v40 = vsel %vm4871_vm15, %v3502_v53, %v3507_v37  ;;  %vm4872_vm7 = vmmov %vm4865_vm1  ;;  %v3551_v53 = vunpack.i.l.bf16 %v3550_v10 }
 0x238   :  { %v1800_v63 = vsel %vm4872_vm7, %v3501_v19, %v3506_v34  ;;  %vm4873_vm9 = vmmov %vm4865_vm1 }
 0x239   :  { %v1808_v47 = vsel %vm4873_vm9, %v3521_v58, %v3496_v56  ;;  %vm4874_vm11 = vmmov %vm4865_vm1  ;;  %vm4875_vm1 = vcmask 261120   ;;  %v3262_v49 = vpack.c.bf16 %v1801_v40, %v1800_v63 }
 0x23a   :  { %v1809_v48 = vsel %vm4874_vm11, %v3522_v46, %v3497_v33  ;;  %3117 = vmatmul.mubr.msk.f32.vlgmr.msra.gmra.mrb[20].mxu1 %vm4875_vm1, %v4268_v9  ;;  %vm4876_vm5 = vmmov %vm4875_vm1 }
 0x23b   :  { %3107 = vmatmul.mubr.msk.f32.vlgmr.msra.gmra.mrb[20].mxu0 %vm4876_vm5, %v4268_v9  ;;  %3258 = vmatpush1.bf16.msk.msra.mxu1 %vm3257_vm0, %v3256_v51  ;;  %v3250_v43 = vpack.c.bf16 %v1809_v48, %v1808_v47  ;;  %v3535_v9 = vpop.permute.xlu1 %3534  ;;  %vm4877_vm10 = vmmov %vm4872_vm7  ;;  %vm4887_vm5 = vnez %v4818_v44  ;;  %v3120_v51 = vld [vmem:[%s4772_s3 + $0x28] sm:$0xff] }
 0x23c   :  { %3246 = vmatpush1.bf16.msk.msra.mxu0 %vm4545_vm6, %v3244_v38  ;;  %3261 = vmatprep.subr.msk.bf16.mxu1 %vm3254_vm3, %v3259_v1  ;;  %v1787_v45 = vsel %vm4877_vm10, %v3527_v22, %v3532_v7  ;;  %vm4878_vm8 = vmmov %vm4872_vm7  ;;  %v3537_v56 = vunpack.i.h.bf16 %v3535_v9  ;;  %v3536_v61 = vunpack.i.l.bf16 %v3535_v9 }
 0x23d   :  { %v1786_v33 = vsel %vm4878_vm8, %v3526_v5, %v3531_v39  ;;  %2473 = vmatprep.mubr.f32.mxu1 %v3581_v4  ;;  %3249 = vmatprep.subr.msk.bf16.mxu0 %vm3242_vm4, %v3247_v16  ;;  %vm4879_vm12 = vmmov %vm4872_vm7 }
 0x23e   :  { %v1791_v62 = vsel %vm4879_vm12, %v3462_v8, %v3527_v22  ;;  %vm4880_vm3 = vmmov %vm4872_vm7  ;;  %2396 = vmatprep.mubr.f32.mxu0 %v3581_v4 }
 0x23f   :  { %v1790_v29 = vsel %vm4880_vm3, %v3461_v30, %v3526_v5  ;;  %vm4881_vm15 = vmmov %vm4875_vm1  ;;  %3264 = vmatpush1.bf16.msk.msra.mxu1 %vm3257_vm0, %v3262_v49 }
 0x240   :  { %3118 = vmatmul.mubr.msk.f32.gmra.mrb[22].mxu1 %vm4881_vm15, %v4290_v12  ;;  %vm4882_vm14 = vmmov %vm4880_vm3  ;;  %3252 = vmatpush1.bf16.msk.msra.mxu0 %vm4545_vm6, %v3250_v43  ;;  %v3268_v15 = vpack.c.bf16 %v1791_v62, %v1790_v29 }
 0x241   :  { %v1783_v17 = vsel %vm4882_vm14, %v3532_v7, %v3537_v56  ;;  %vm4883_vm4 = vmmov %vm4880_vm3  ;;  %2630 = vmatprep.mubr.f32.mxu1 %v3581_v4  ;;  %v4731_v7 = vstv %s4775_s6  ;;  %s3585_s6 = smov [#allocation4]  }
 0x242   :  { %v1811_v8 = vsel %vm4883_vm4, %v3537_v56, %v3472_v55  ;;  %vm4884_vm7 = vmmov %vm4880_vm3  ;;  %v3265_v55 = vpack.c.bf16 %v1787_v45, %v1786_v33  ;;  %s2971_s12 = sshll.u32 %s3585_s6, 4  ;;  %s2972_s12 = int_to_ptr.vmem [resolvable:$true] %s2971_s12 }
 0x243   :  { %v1782_v24 = vsel %vm4884_vm7, %v3531_v39, %v3536_v61  ;;  %vm4885_vm9 = vmmov %vm4880_vm3  ;;  %s3557_s13 = scalar_lea.vmem %s2972_s12, 128  ;;  %p3562_p1 = scmp.lt.s32.totalorder %s2972_s12, %s2972_s12 }
 0x244   :  { %v1810_v30 = vsel %vm4885_vm9, %v3536_v61, %v3471_v2  ;;  %vm4886_vm11 = vmmov %vm4875_vm1  ;;  %v3540_v2 = vpop.permute.xlu1 %3539  ;;  %v3280_v35 = vpack.c.bf16 %v1783_v17, %v1782_v24  ;;  %p3558_p0 = scmp.ne.s32.totalorder %s2972_s12, %s3557_s13  ;;  %p3563_p2 = scmp.lt.s32.totalorder %s3557_s13, %s3557_s13 }
 0x245   :  { %3108 = vmatmul.mubr.msk.f32.gmra.mrb[22].mxu0 %vm4886_vm11, %v4290_v12  ;;  %vm3266_vm1 = vmpackc.low %vm3930_vm2, %vm3930_vm2  ;;  %v3277_v19 = vpack.c.bf16 %v1811_v8, %v1810_v30  ;;  %v3542_v60 = vunpack.i.h.bf16 %v3540_v2  ;;  %v3541_v31 = vunpack.i.l.bf16 %v3540_v2 }
 0x246   :  { %vm3269_vm10 = vmpackc.low %vm4887_vm5, %vm4887_vm5  ;;  %3267 = vmatprep.subr.msk.bf16.mxu0 %vm3266_vm1, %v3265_v55  ;;  %2553 = vmatprep.mubr.f32.mxu0 %v3581_v4  ;;  %p3564_p3 = por %p3563_p2, %p3562_p1 }
 0x247   :  { %vm4888_vm8 = vmmov %vm4880_vm3  ;;  %v1784_v50 = vsel %vm4883_vm4, %v3541_v31, %v3551_v53 }
 0x248   :  { %v1813_v54 = vsel %vm4888_vm8, %v3552_v57, %v3522_v46  ;;  %vm4889_vm12 = vmmov %vm4880_vm3  ;;  %vm4890_vm3 = vnez %v4812_v25  ;;  %v2818_v25 = vpop.permute.xlu1 %2817  ;;  %p3565_p4 = pnand %p3564_p3, %p3558_p0 }
 0x249   :  { %v1812_v12 = vsel %vm4889_vm12, %v3551_v53, %v3521_v58  ;;  %vm3278_vm15 = vmpackc.low %vm4890_vm3, %vm4890_vm3 }
 0x24a   :  { %vm3281_vm0 = vmpackc.low %vm4891_vm13, %vm4891_vm13  ;;  %v3283_v36 = vpack.c.bf16 %v1813_v54, %v1812_v12  ;;  %3279 = vmatprep.subr.msk.bf16.mxu1 %vm3278_vm15, %v3277_v19 }
 0x24b   :  { %vm4892_vm6 = vmmov %vm4883_vm4 }
 0x24c   :  { %v1785_v37 = vsel %vm4892_vm6, %v3542_v60, %v3552_v57  ;;  %vm4893_vm14 = vmmov %vm4883_vm4  ;;  %v2862_v52 = vpop.permute.xlu1 %2861 }
 0x24d   :  { %v1789_v34 = vsel %vm4893_vm14, %v3547_v20, %v3542_v60  ;;  %vm4894_vm7 = vmmov %vm4883_vm4  ;;  %v3286_v38 = vpack.c.bf16 %v1785_v37, %v1784_v50 }
 0x24e   :  { %v1788_v28 = vsel %vm4894_vm7, %v3546_v18, %v3541_v31  ;;  %vm4895_vm9 = vmmov %vm4886_vm11 }
 0x24f   :  { %3139 = vmatmul.mubr.msk.f32.vlgmr.msra.gmra.mrb[16].mxu1 %vm4895_vm9, %v3119_v13  ;;  %vm4896_vm11 = vmmov %vm4883_vm4  ;;  %v3271_v27 = vpack.c.bf16 %v1789_v34, %v1788_v28 }
 0x250   :  { %v1792_v46 = vsel %vm4896_vm11, %v3516_v26, %v3546_v18  ;;  %vm4897_vm8 = vmmov %vm4883_vm4  ;;  %3282 = vmatpush1.bf16.msk.msra.mxu1 %vm3281_vm0, %v3280_v35  ;;  %2636 = vmatprep.mubr.f32.mxu1 %v3581_v4 }
 0x251   :  { %v1793_v58 = vsel %vm4897_vm8, %v3517_v21, %v3547_v20  ;;  %vm4898_vm12 = vmmov %vm4895_vm9  ;;  %3285 = vmatprep.subr.msk.bf16.mxu1 %vm3278_vm15, %v3283_v36  ;;  %v4723_v21 = vpop.permute.xlu0 %2822 }
 0x252   :  { %3129 = vmatmul.mubr.msk.f32.vlgmr.msra.gmra.mrb[16].mxu0 %vm4898_vm12, %v3119_v13  ;;  %v3274_v23 = vpack.c.bf16 %v1793_v58, %v1792_v46  ;;  %vm4899_vm6 = vmmov %vm4895_vm9 }
 0x253   :  { %3270 = vmatpush1.bf16.msk.msra.mxu0 %vm3269_vm10, %v3268_v15  ;;  %2559 = vmatprep.mubr.f32.mxu0 %v3581_v4  ;;  %vm4900_vm14 = vmmov %vm4899_vm6 }
 0x254   :  { %3140 = vmatmul.mubr.msk.f32.gmra.mrb[18].mxu1 %vm4899_vm6, %v3120_v51  ;;  %3273 = vmatprep.subr.msk.bf16.mxu0 %vm3266_vm1, %v3271_v27  ;;  %vm4901_vm3 = vmmov %vm4899_vm6 }
 0x255   :  { %3288 = vmatpush1.bf16.msk.msra.mxu1 %vm3281_vm0, %v3286_v38  ;;  %2784 = vmatprep.mubr.f32.mxu1 %v3581_v4  ;;  %vm4902_vm2 = vmmov %vm4901_vm3  ;;  %v4734_v49 = vpop.permute.xlu0 %2866 }
 0x256   :  { %3130 = vmatmul.mubr.msk.f32.gmra.mrb[18].mxu0 %vm4900_vm14, %v3120_v51  ;;  %vm4903_vm1 = vmmov %vm4902_vm2 }
 0x257   :  { %3276 = vmatpush1.bf16.msk.msra.mxu0 %vm3269_vm10, %v3274_v23  ;;  %2707 = vmatprep.mubr.f32.mxu0 %v3581_v4  ;;  %vm4904_vm5 = vmmov %vm4903_vm1 }
 0x258   :  { %3159 = vmatmul.mubr.msk.f32.vlgmr.msra.gmra.mrb[20].mxu1 %vm4902_vm2, %v3119_v13 }
 0x259   :  { %2790 = vmatprep.mubr.f32.mxu1 %v3581_v4 }
 0x25a   :  { %3149 = vmatmul.mubr.msk.f32.vlgmr.msra.gmra.mrb[20].mxu0 %vm4901_vm3, %v3119_v13 }
 0x25b   :  { %2713 = vmatprep.mubr.f32.mxu0 %v3581_v4 }
 0x25c   :  { %3160 = vmatmul.mubr.msk.f32.gmra.mrb[22].mxu1 %vm4904_vm5, %v3120_v51 }
 0x25e   :  { %3150 = vmatmul.mubr.msk.f32.gmra.mrb[22].mxu0 %vm4903_vm1, %v3120_v51 }
 0x322   :  { %v2632_v32 = vpop.f32.mrb[16].mxu1 }
 0x323   :  { %v2827_v41 = vadd.f32 %v2818_v25, %v2632_v32  ;;  %v2634_v6 = vpop.f32.mrb[17].mxu1 }
 0x324   :  { %v2828_v42 = vadd.f32 %v2818_v25, %v2634_v6 }
 0x325   :  { %v2555_v44 = vpop.f32.mrb[16].mxu0  ;;  %v2843_v11 = vmax.f32 %v2827_v41, 0.0 }
 0x326   :  { %v2825_v26 = vadd.f32 %v2818_v25, %v2555_v44  ;;  %v2557_v3 = vpop.f32.mrb[17].mxu0  ;;  %v2844_v63 = vmax.f32 %v2828_v42, 0.0 }
 0x327   :  { %v2826_v0 = vadd.f32 %v2818_v25, %v2557_v3  ;;  %v2638_v40 = vpop.f32.mrb[18].mxu1  ;;  %v2871_v43 = vmul.f32 %v2862_v52, %v2843_v11 }
 0x328   :  { %v2841_v59 = vmax.f32 %v2825_v26, 0.0  ;;  %v2835_v1 = vadd.f32 %v4723_v21, %v2638_v40  ;;  %v2640_v47 = vpop.f32.mrb[19].mxu1  ;;  %v2872_v45 = vmul.f32 %v2862_v52, %v2844_v63 }
 0x329   :  { %v2842_v4 = vmax.f32 %v2826_v0, 0.0  ;;  %v2561_v14 = vpop.f32.mrb[18].mxu0  ;;  %v2836_v22 = vadd.f32 %v4723_v21, %v2640_v47 }
 0x32a   :  { %v2833_v48 = vadd.f32 %v4723_v21, %v2561_v14  ;;  %v2563_v5 = vpop.f32.mrb[19].mxu0  ;;  %v2851_v16 = vmax.f32 %v2835_v1, 0.0  ;;  %v2869_v20 = vmul.f32 %v2862_v52, %v2841_v59 }
 0x32b   :  { %v2834_v39 = vadd.f32 %v4723_v21, %v2563_v5  ;;  %v2852_v9 = vmax.f32 %v2836_v22, 0.0  ;;  %v2870_v33 = vmul.f32 %v2862_v52, %v2842_v4  ;;  %v2786_v62 = vpop.f32.mrb[20].mxu1 }
 0x32c   :  { %v2849_v18 = vmax.f32 %v2833_v48, 0.0  ;;  %v2879_v56 = vmul.f32 %v4734_v49, %v2851_v16  ;;  %v2831_v17 = vadd.f32 %v2818_v25, %v2786_v62  ;;  %v2788_v24 = vpop.f32.mrb[21].mxu1 }
 0x32d   :  { %v2850_v61 = vmax.f32 %v2834_v39, 0.0  ;;  %v2709_v10 = vpop.f32.mrb[20].mxu0  ;;  %v2880_v57 = vmul.f32 %v4734_v49, %v2852_v9  ;;  %v2832_v54 = vadd.f32 %v2818_v25, %v2788_v24 }
 0x32e   :  { %v2877_v29 = vmul.f32 %v4734_v49, %v2849_v18  ;;  %v2829_v53 = vadd.f32 %v2818_v25, %v2709_v10  ;;  %v2711_v8 = vpop.f32.mrb[21].mxu0  ;;  %v2899_v30 = vadd.f32 %v2879_v56, %v2871_v43  ;;  %v2847_v35 = vmax.f32 %v2831_v17, 0.0 }
 0x32f   :  { %v2878_v55 = vmul.f32 %v4734_v49, %v2850_v61  ;;  %v2830_v19 = vadd.f32 %v2818_v25, %v2711_v8  ;;  %v2906_v2 = vadd.f32 %v2880_v57, %v2872_v45  ;;  %v2848_v36 = vmax.f32 %v2832_v54, 0.0  ;;  %v2792_v34 = vpop.f32.mrb[22].mxu1 }
 0x330   :  { %v2885_v12 = vadd.f32 %v2877_v29, %v2869_v20  ;;  %v2845_v13 = vmax.f32 %v2829_v53, 0.0  ;;  %v2900_v60 = vrot.slane %v2899_v30, 4  ;;  %v2875_v58 = vmul.f32 %v2862_v52, %v2847_v35  ;;  %v2794_v51 = vpop.f32.mrb[23].mxu1 }
 0x331   :  { %v2892_v31 = vadd.f32 %v2878_v55, %v2870_v33  ;;  %v2846_v15 = vmax.f32 %v2830_v19, 0.0  ;;  %v2715_v37 = vpop.f32.mrb[22].mxu0  ;;  %v2907_v28 = vrot.slane %v2906_v2, 4  ;;  %v2876_v25 = vmul.f32 %v2862_v52, %v2848_v36 }
 0x332   :  { %v2886_v50 = vrot.slane %v2885_v12, 4  ;;  %v2873_v46 = vmul.f32 %v2862_v52, %v2845_v13  ;;  %v2717_v27 = vpop.f32.mrb[23].mxu0  ;;  %v2901_v38 = vadd.f32 %v2900_v60, %v2899_v30  ;;  %v2837_v6 = vadd.f32 %v4723_v21, %v2715_v37 }
 0x333   :  { %v2893_v23 = vrot.slane %v2892_v31, 4  ;;  %v2874_v32 = vmul.f32 %v2862_v52, %v2846_v15  ;;  %v2908_v44 = vadd.f32 %v2907_v28, %v2906_v2  ;;  %v2839_v26 = vadd.f32 %v4723_v21, %v2792_v34 }
 0x334   :  { %v2887_v41 = vadd.f32 %v2886_v50, %v2885_v12  ;;  %v2902_v42 = vrot.slane %v2901_v38, 2  ;;  %v2838_v0 = vadd.f32 %v4723_v21, %v2717_v27  ;;  %v2840_v11 = vadd.f32 %v4723_v21, %v2794_v51 }
 0x335   :  { %v2894_v3 = vadd.f32 %v2893_v23, %v2892_v31  ;;  %v2909_v40 = vrot.slane %v2908_v44, 2  ;;  %v2853_v63 = vmax.f32 %v2837_v6, 0.0  ;;  %v2855_v4 = vmax.f32 %v2839_v26, 0.0 }
 0x336   :  { %v2888_v59 = vrot.slane %v2887_v41, 2  ;;  %v2903_v1 = vadd.f32 %v2902_v42, %v2901_v38  ;;  %v2854_v47 = vmax.f32 %v2838_v0, 0.0  ;;  %v2856_v48 = vmax.f32 %v2840_v11, 0.0 }
 0x337   :  { %v2895_v14 = vrot.slane %v2894_v3, 2  ;;  %v2910_v5 = vadd.f32 %v2909_v40, %v2908_v44  ;;  %v2881_v52 = vmul.f32 %v4734_v49, %v2853_v63  ;;  %v2883_v16 = vmul.f32 %v4734_v49, %v2855_v4 }
 0x338   :  { %v2889_v22 = vadd.f32 %v2888_v59, %v2887_v41  ;;  %v2904_v39 = vrot.slane %v2903_v1, 1  ;;  %v2882_v20 = vmul.f32 %v4734_v49, %v2854_v47  ;;  %v2884_v21 = vmul.f32 %v4734_v49, %v2856_v48 }
 0x339   :  { %v2896_v43 = vadd.f32 %v2895_v14, %v2894_v3  ;;  %v2911_v9 = vrot.slane %v2910_v5, 1  ;;  %v2913_v45 = vadd.f32 %v2881_v52, %v2873_v46  ;;  %v2927_v33 = vadd.f32 %v2883_v16, %v2875_v58 }
 0x33a   :  { %v2890_v18 = vrot.slane %v2889_v22, 1  ;;  %v2905_v56 = vadd.f32 %v2904_v39, %v2903_v1  ;;  %v2920_v10 = vadd.f32 %v2882_v20, %v2874_v32  ;;  %v2934_v62 = vadd.f32 %v2884_v21, %v2876_v25 }
 0x33b   :  { %v2897_v61 = vrot.slane %v2896_v43, 1  ;;  %v2912_v57 = vadd.f32 %v2911_v9, %v2910_v5  ;;  %v2914_v53 = vrot.slane %v2913_v45, 4  ;;  %v2928_v17 = vrot.slane %v2927_v33, 4 }
 0x33c   :  { %v2891_v29 = vadd.f32 %v2890_v18, %v2889_v22  ;;  %v2945_v8 = vadd.f32 %v4731_v7, %v2905_v56  ;;  %v2921_v30 = vrot.slane %v2920_v10, 4  ;;  %v2935_v55 = vrot.slane %v2934_v62, 4 }
 0x33d   :  { %v2898_v24 = vadd.f32 %v2897_v61, %v2896_v43  ;;  %v2946_v49 = vadd.f32 %v4731_v7, %v2912_v57  ;;  %v2915_v54 = vadd.f32 %v2914_v53, %v2913_v45  ;;  %v2929_v12 = vadd.f32 %v2928_v17, %v2927_v33 }
 0x33e   :  { %v2943_v19 = vadd.f32 %v4731_v7, %v2891_v29  ;;  %2955 = vst [vmem:[#allocation4 + $0x2] sm:$0x1] %v2945_v8  ;;  %v2922_v13 = vadd.f32 %v2921_v30, %v2920_v10  ;;  %v2936_v35 = vadd.f32 %v2935_v55, %v2934_v62 }
 0x33f   :  { %v2944_v2 = vadd.f32 %v4731_v7, %v2898_v24  ;;  %2957 = vst [vmem:[#allocation4 + $0x3] sm:$0x1] %v2946_v49  ;;  %v2916_v60 = vrot.slane %v2915_v54, 2  ;;  %v2930_v31 = vrot.slane %v2929_v12, 2 }
 0x340   :  { %2951 = vst [vmem:[#allocation4] sm:$0x1] %v2943_v19  ;;  %v2923_v15 = vrot.slane %v2922_v13, 2  ;;  %v2937_v36 = vrot.slane %v2936_v35, 2 }
 0x341   :  { %2953 = vst [vmem:[#allocation4 + $0x1] sm:$0x1] %v2944_v2  ;;  %v2917_v37 = vadd.f32 %v2916_v60, %v2915_v54  ;;  %v2931_v34 = vadd.f32 %v2930_v31, %v2929_v12 }
 0x342   :  { %v2924_v50 = vadd.f32 %v2923_v15, %v2922_v13  ;;  %v2938_v28 = vadd.f32 %v2937_v36, %v2936_v35 }
 0x343   :  { %v2918_v46 = vrot.slane %v2917_v37, 1  ;;  %v2932_v58 = vrot.slane %v2931_v34, 1 }
 0x344   :  { %v2925_v27 = vrot.slane %v2924_v50, 1  ;;  %v2939_v51 = vrot.slane %v2938_v28, 1 }
 0x345   :  { %v2919_v38 = vadd.f32 %v2918_v46, %v2917_v37  ;;  %v2933_v23 = vadd.f32 %v2932_v58, %v2931_v34 }
 0x346   :  { %v2926_v32 = vadd.f32 %v2925_v27, %v2924_v50  ;;  %v2940_v25 = vadd.f32 %v2939_v51, %v2938_v28 }
 0x347   :  { %v2947_v41 = vadd.f32 %v4731_v7, %v2919_v38  ;;  %v2949_v44 = vadd.f32 %v4731_v7, %v2933_v23 }
 0x348   :  { %v2948_v6 = vadd.f32 %v4731_v7, %v2926_v32  ;;  %v2950_v26 = vadd.f32 %v4731_v7, %v2940_v25 }
 0x349   :  { %2959 = vst [vmem:[#allocation4 + $0x4] sm:$0x1] %v2947_v41  ;;  %2963 = vst [vmem:[#allocation4 + $0x6] sm:$0x1] %v2949_v44 }
 0x34a   :  { %2961 = vst [vmem:[#allocation4 + $0x5] sm:$0x1] %v2948_v6  ;;  %2965 = vst [vmem:[#allocation4 + $0x7] sm:$0x1] %v2950_v26 }
 0x34b   :  { %3568 = shalt.err (!%p3565_p4)
}
 0x34c   :  { %s3569_s16 = scalar_lea.hbm %s4776_s7, 128 }
 0x34d   :  { %p3570_p5 = scmp.ne.s32.totalorder %s4776_s7, %s3569_s16  ;;  %p3573_p6 = scmp.lt.u32.totalorder %s3569_s16, %s4776_s7 }
 0x34f   :  { %p3575_p7 = pnand %p3573_p6, %p3570_p5 }
 0x351   :  { %3578 = shalt.err (!%p3575_p7)
}
 0x352   :  { %s3586_s21 = smov 16  }
 0x353   :  { %2977 = dma.vmem_to_hbm [thread:$0]  %s2972_s12, 128, %s4776_s7, [#allocation5], %s3586_s21, %s3586_s21, %s3582_s9  }
 0x354   :  { %3579 = dma.done.wait [#allocation5], 128  }
 0x355   :  { %3580 = vsyncadd [#allocation5], 4294967168 }
 0x356   :  { %2981 = vsyncpa [#allocation5], 1 }

</bundles_post_ra>
